<compile_context>
chip_gen: v5e
topology: v5e:2x2
jax: 0.10.0
libtpu: 0.0.40
codegen_flags: <defaults>
</compile_context>

<pallas_src>
import inspect

import jax
import jax.numpy as jnp
from jax.experimental import pallas as pl
from jax.experimental.pallas import tpu as pltpu


def _has_pipeline_mode():
    try:
        return (hasattr(pl, "Buffered")
                and "pipeline_mode" in inspect.signature(pl.BlockSpec).parameters)
    except (TypeError, ValueError):
        return False


_HAS_PIPELINE_MODE = _has_pipeline_mode()


def _const_spec(shape):
    """BlockSpec for a grid-invariant operand; single-buffered when supported."""
    index_map = lambda i: (0,) * len(shape)
    if _HAS_PIPELINE_MODE:
        return pl.BlockSpec(shape, index_map, pipeline_mode=pl.Buffered(1))
    return pl.BlockSpec(shape, index_map)


def make_sdf_kernel(hidden_dim, num_layers, skip_connections, tile_n):
    skips = frozenset(skip_connections)
    H = hidden_dim
    T = tile_n

    def kernel(ct_ref, *refs):
        x4 = refs[-1]          # VMEM scratch (H, 4*T) f32: [h | t0 | t1 | t2]
        out_ref = refs[-2]     # (1, 4*T): [sdf | d/dx | d/dy | d/dz]
        it = iter(refs[:-2])   # weights / biases in layer order

        ct = ct_ref[...].astype(jnp.float32)                       # (3, T)
        c0 = ct[0:1, :]
        c1 = ct[1:2, :]
        c2 = ct[2:3, :]

        # ---- layer 0: Linear(3, H) + ReLU, tangent seeds d h / d coord_k ----
        w0 = next(it)[...]                                         # (H, 3)
        b0 = next(it)[...]                                         # (H, 1)
        zp = jnp.dot(w0, ct, preferred_element_type=jnp.float32) + b0   # (H, T)
        mask = zp > 0.0
        x4[:, 0 * T:1 * T] = jnp.where(mask, zp, 0.0)
        x4[:, 1 * T:2 * T] = jnp.where(mask, w0[:, 0:1], 0.0)
        x4[:, 2 * T:3 * T] = jnp.where(mask, w0[:, 1:2], 0.0)
        x4[:, 3 * T:4 * T] = jnp.where(mask, w0[:, 2:3], 0.0)

        # ---- hidden layers (unrolled at trace time) ----
        for i in range(1, num_layers):
            if i in skips:
                wh = next(it)[...]                                 # (H, H)
                wc = next(it)[...]                                 # (H, 3)
                b = next(it)[...]                                  # (H, 1)
                z = jnp.dot(wh, x4[...], preferred_element_type=jnp.float32)
                # K=3 coordinate term on the VPU (no extra MXU weight swap).
                cterm = wc[:, 0:1] * c0 + wc[:, 1:2] * c1 + wc[:, 2:3] * c2
                zp = z[:, 0 * T:1 * T] + cterm + b
                mask = zp > 0.0
                x4[:, 0 * T:1 * T] = jnp.where(mask, zp, 0.0)
                x4[:, 1 * T:2 * T] = jnp.where(mask, z[:, 1 * T:2 * T] + wc[:, 0:1], 0.0)
                x4[:, 2 * T:3 * T] = jnp.where(mask, z[:, 2 * T:3 * T] + wc[:, 1:2], 0.0)
                x4[:, 3 * T:4 * T] = jnp.where(mask, z[:, 3 * T:4 * T] + wc[:, 2:3], 0.0)
            else:
                w = next(it)[...]                                  # (H, H)
                b = next(it)[...]                                  # (H, 1)
                z = jnp.dot(w, x4[...], preferred_element_type=jnp.float32)
                zp = z[:, 0 * T:1 * T] + b
                mask = zp > 0.0
                x4[:, 0 * T:1 * T] = jnp.where(mask, zp, 0.0)
                x4[:, 1 * T:2 * T] = jnp.where(mask, z[:, 1 * T:2 * T], 0.0)
                x4[:, 2 * T:3 * T] = jnp.where(mask, z[:, 2 * T:3 * T], 0.0)
                x4[:, 3 * T:4 * T] = jnp.where(mask, z[:, 3 * T:4 * T], 0.0)

        # ---- sdf head: Linear(H, 1), fused over all 4 streams ----
        whd = next(it)[...]            # (8, H): row 0 = head weight, rest zero
        bhd = next(it)[...]            # (1, 1)
        zh = jnp.dot(whd, x4[...], preferred_element_type=jnp.float32)   # (8, 4T)
        row = zh[0:1, :]                                                  # (1, 4T)
        out_ref[:, 0 * T:1 * T] = (row[:, 0 * T:1 * T] + bhd).astype(out_ref.dtype)
        out_ref[:, 1 * T:4 * T] = row[:, 1 * T:4 * T].astype(out_ref.dtype)

    return kernel


def sdf_network_forward(coords, params, *, hidden_dim, num_layers,
                        skip_connections, tile_n=1024):
    """Returns {'sdf': (N,1), 'gradients': (N,3)} like SDFNetwork.forward."""
    assert tile_n % 128 == 0, "tile_n must be a multiple of 128 (lane width)"
    skips = set(skip_connections)
    H = hidden_dim
    T = tile_n
    N = coords.shape[0]

    # Round the grid up to an even tile count so v7x's two TensorCores stay
    # balanced under dimension_semantics=("parallel",).
    grid = max(1, pl.cdiv(N, T))
    if grid % 2:
        grid += 1
    n_pad = grid * T

    # Feature-major coords, zero-padded along the point (lane) axis.
    ct = jnp.pad(coords.astype(jnp.float32).T, ((0, 0), (0, n_pad - N)))

    # Host-side weight prep: oriented for `W @ x` (PyTorch (out, in) layout),
    # skip weights split into hidden/coord halves, biases as (out, 1) columns,
    # head zero-padded to 8 rows for an aligned MXU tile.
    flat = []
    w0, b0 = params[0]
    flat += [w0.astype(jnp.float32), b0.reshape(H, 1).astype(jnp.float32)]
    for i in range(1, num_layers):
        w, b = params[i]
        if i in skips:
            flat += [w[:, :H].astype(jnp.float32), w[:, H:].astype(jnp.float32)]
        else:
            flat += [w.astype(jnp.float32)]
        flat += [b.reshape(H, 1).astype(jnp.float32)]
    wh, bh = params[num_layers]
    wh8 = jnp.zeros((8, H), jnp.float32).at[0:1, :].set(
        wh.astype(jnp.float32).reshape(1, H))
    flat += [wh8, bh.reshape(1, 1).astype(jnp.float32)]

    kernel = make_sdf_kernel(hidden_dim, num_layers, skip_connections, T)

    in_specs = [pl.BlockSpec((3, T), lambda i: (0, i))]
    in_specs += [_const_spec(a.shape) for a in flat]

    out_shape = jax.ShapeDtypeStruct((1, 4 * n_pad), jnp.float32)
    out_specs = pl.BlockSpec((1, 4 * T), lambda i: (0, i))

    # VMEM budget: activation slab + matmul result temp + headroom + pipelined
    # IO blocks + resident weights, 2x margin, clamped to a range safe on
    # v5e (16 MiB scoped default) through v7x (64 MiB physical).
    w_bytes = sum(a.size for a in flat) * 4
    est = (3 * H * 4 * T * 4           # x4 scratch + z temp + slack
           + 2 * 3 * T * 4             # ct blocks (double-buffered)
           + 2 * 4 * T * 4             # out blocks (double-buffered)
           + w_bytes)
    vmem_limit = int(min(max(2 * est, 16 << 20), 48 << 20))

    n_skip = len(skips & set(range(1, num_layers)))
    flops = n_pad * (2 * 3 * H                       # layer 0
                     + (num_layers - 1) * 8 * H * H  # fused hidden layers
                     + n_skip * 8 * H                # VPU coord terms
                     + 2 * 8 * H * 4)                # fused head
    bytes_accessed = (ct.size + 4 * n_pad) * 4 + w_bytes
    cost = pl.CostEstimate(flops=int(flops), transcendentals=0,
                           bytes_accessed=int(bytes_accessed))

    out = pl.pallas_call(
        kernel,
        grid=(grid,),
        in_specs=in_specs,
        out_specs=out_specs,
        out_shape=out_shape,
        scratch_shapes=[pltpu.VMEM((H, 4 * T), jnp.float32)],
        compiler_params=pltpu.CompilerParams(
            dimension_semantics=("parallel",),
            vmem_limit_bytes=vmem_limit),
        cost_estimate=cost,
    )(ct, *flat)

    # Per-tile lane layout is [sdf | d/dx | d/dy | d/dz], each T lanes wide.
    o = out.reshape(grid, 4, T)
    sdf = o[:, 0, :].reshape(-1)[:N].reshape(N, 1)
    grads = o[:, 1:4, :].transpose(0, 2, 1).reshape(-1, 3)[:N]
    return {"sdf": sdf, "gradients": grads}


def init_params(key, hidden_dim, num_layers, skip_connections,
                use_sphere_init=True, sphere_radius=1.0):
    """Deterministic PyTorch-Linear-style init + sphere init, as in __init__."""
    skips = set(skip_connections)
    dims = [(3, hidden_dim)]
    for i in range(1, num_layers):
        # NOTE: the reference __init__ checks skip_connections against the
        # construction-loop counter (off by one vs. the forward pass); we size
        # weights to match the *forward-pass* semantics so the network runs.
        in_dim = hidden_dim + 3 if i in skips else hidden_dim
        dims.append((in_dim, hidden_dim))
    dims.append((hidden_dim, 1))  # sdf_head

    params = []
    for (fan_in, fan_out) in dims:
        key, kw, kb = jax.random.split(key, 3)
        bound = 1.0 / (fan_in ** 0.5)
        w = jax.random.uniform(kw, (fan_out, fan_in), jnp.float32, -bound, bound)
        b = jax.random.uniform(kb, (fan_out,), jnp.float32, -bound, bound)
        params.append((w, b))

    if use_sphere_init:
        w0, b0 = params[0]
        params[0] = (w0.at[0, :3].set(1.0), b0.at[0].set(0.0))
        wh, bh = params[-1]
        params[-1] = (wh.at[0, 0].set(1.0), bh.at[0].set(-sphere_radius))
    return params


def sdf_reference(coords, params, skip_connections):
    """Pure-JAX reference (autodiff gradients) for validation."""
    skips = set(skip_connections)

    def single_sdf(c):
        w0, b0 = params[0]
        x = jax.nn.relu(w0 @ c + b0)
        for i in range(1, len(params) - 1):
            wi, bi = params[i]
            if i in skips:
                x = jnp.concatenate([x, c])
            x = jax.nn.relu(wi @ x + bi)
        wh, bh = params[-1]
        return (wh @ x + bh)[0]

    sdf = jax.vmap(single_sdf)(coords)[:, None]
    grads = jax.vmap(jax.grad(single_sdf))(coords)
    return sdf, grads


if __name__ == "__main__":
    hidden_dim = 64
    num_layers = 4
    skip_connections = [2]
    sphere_radius = 1.0
    N = 600           # small; deliberately not a multiple of tile_n
    tile_n = 256      # small test tile; sweep 1024-2048 on real workloads

    key = jax.random.PRNGKey(0)
    key, pkey, ckey = jax.random.split(key, 3)
    params = init_params(pkey, hidden_dim, num_layers, skip_connections,
                         use_sphere_init=True, sphere_radius=sphere_radius)
    coords = jax.random.normal(ckey, (N, 3), dtype=jnp.float32)

    out = sdf_network_forward(coords, params,
                              hidden_dim=hidden_dim,
                              num_layers=num_layers,
                              skip_connections=skip_connections,
                              tile_n=tile_n)
    jax.block_until_ready(out["sdf"])
    jax.block_until_ready(out["gradients"])

    sdf_ref, grad_ref = sdf_reference(coords, params, skip_connections)
    assert out["sdf"].shape == (N, 1) and out["gradients"].shape == (N, 3)
    assert jnp.allclose(out["sdf"], sdf_ref, atol=1e-4, rtol=1e-4)
    assert jnp.allclose(out["gradients"], grad_ref, atol=1e-4, rtol=1e-4)

    print("KERNEL_OK")
</pallas_src>

<mosaic_0001>
module attributes {stable_mosaic.version = 11 : i64} {
  func.func @kernel(%arg0: i32, %arg1: memref<3x256xf32, #tpu.memory_space<vmem>>, %arg2: memref<64x3xf32, #tpu.memory_space<vmem>>, %arg3: memref<64x1xf32, #tpu.memory_space<vmem>>, %arg4: memref<64x64xf32, #tpu.memory_space<vmem>>, %arg5: memref<64x1xf32, #tpu.memory_space<vmem>>, %arg6: memref<64x64xf32, #tpu.memory_space<vmem>>, %arg7: memref<64x3xf32, #tpu.memory_space<vmem>>, %arg8: memref<64x1xf32, #tpu.memory_space<vmem>>, %arg9: memref<64x64xf32, #tpu.memory_space<vmem>>, %arg10: memref<64x1xf32, #tpu.memory_space<vmem>>, %arg11: memref<8x64xf32, #tpu.memory_space<vmem>>, %arg12: memref<1x1xf32, #tpu.memory_space<vmem>>, %arg13: memref<1x1024xf32, #tpu.memory_space<vmem>>, %arg14: memref<64x1024xf32, #tpu.memory_space<vmem>>) attributes {dimension_semantics = [#tpu.dimension_semantics<parallel>], iteration_bounds = array<i64: 4>, scalar_prefetch = 0 : i64, scratch_operands = 1 : i64, tpu.core_type = #tpu.core_type<tc>, window_params = [{transform_indices = @transform_0, window_bounds = array<i64: 3, 256>}, {pipeline_mode = #tpu.pipeline_mode<synchronous>, transform_indices = @transform_1, window_bounds = array<i64: 64, 3>}, {pipeline_mode = #tpu.pipeline_mode<synchronous>, transform_indices = @transform_2, window_bounds = array<i64: 64, 1>}, {pipeline_mode = #tpu.pipeline_mode<synchronous>, transform_indices = @transform_3, window_bounds = array<i64: 64, 64>}, {pipeline_mode = #tpu.pipeline_mode<synchronous>, transform_indices = @transform_4, window_bounds = array<i64: 64, 1>}, {pipeline_mode = #tpu.pipeline_mode<synchronous>, transform_indices = @transform_5, window_bounds = array<i64: 64, 64>}, {pipeline_mode = #tpu.pipeline_mode<synchronous>, transform_indices = @transform_6, window_bounds = array<i64: 64, 3>}, {pipeline_mode = #tpu.pipeline_mode<synchronous>, transform_indices = @transform_7, window_bounds = array<i64: 64, 1>}, {pipeline_mode = #tpu.pipeline_mode<synchronous>, transform_indices = @transform_8, window_bounds = array<i64: 64, 64>}, {pipeline_mode = #tpu.pipeline_mode<synchronous>, transform_indices = @transform_9, window_bounds = array<i64: 64, 1>}, {pipeline_mode = #tpu.pipeline_mode<synchronous>, transform_indices = @transform_10, window_bounds = array<i64: 8, 64>}, {pipeline_mode = #tpu.pipeline_mode<synchronous>, transform_indices = @transform_11, window_bounds = array<i64: 1, 1>}, {transform_indices = @transform_12, window_bounds = array<i64: 1, 1024>}]} {
    %c0 = arith.constant 0 : index
    %c0_0 = arith.constant 0 : index
    %0 = vector.load %arg1[%c0, %c0_0] : memref<3x256xf32, #tpu.memory_space<vmem>>, vector<3x256xf32>
    %1 = vector.extract_strided_slice %0 {offsets = [0, 0], sizes = [1, 256], strides = [1, 1]} : vector<3x256xf32> to vector<1x256xf32>
    %2 = vector.extract_strided_slice %0 {offsets = [1, 0], sizes = [1, 256], strides = [1, 1]} : vector<3x256xf32> to vector<1x256xf32>
    %3 = vector.extract_strided_slice %0 {offsets = [2, 0], sizes = [1, 256], strides = [1, 1]} : vector<3x256xf32> to vector<1x256xf32>
    %c0_1 = arith.constant 0 : index
    %c0_2 = arith.constant 0 : index
    %4 = vector.load %arg2[%c0_1, %c0_2] : memref<64x3xf32, #tpu.memory_space<vmem>>, vector<64x3xf32>
    %c0_3 = arith.constant 0 : index
    %c0_4 = arith.constant 0 : index
    %5 = vector.load %arg3[%c0_3, %c0_4] : memref<64x1xf32, #tpu.memory_space<vmem>>, vector<64x1xf32>
    %cst = arith.constant dense<0.000000e+00> : vector<64x256xf32>
    %6 = tpu.matmul %4, %0, %cst {dimension_numbers = #tpu.dot_dimension_numbers<[1], [0], [0], [1], [0, 0, 1, 1], [], []>} : vector<64x3xf32>, vector<3x256xf32>, vector<64x256xf32> -> vector<64x256xf32>
    %7 = vector.broadcast %5 : vector<64x1xf32> to vector<64x256xf32>
    %8 = arith.addf %6, %7 : vector<64x256xf32>
    %cst_5 = arith.constant 0.000000e+00 : f32
    %9 = vector.broadcast %cst_5 : f32 to vector<64x256xf32>
    %10 = arith.cmpf ogt, %8, %9 : vector<64x256xf32>
    %cst_6 = arith.constant 0.000000e+00 : f32
    %11 = vector.broadcast %cst_6 : f32 to vector<64x256xf32>
    %12 = arith.select %10, %8, %11 : vector<64x256xi1>, vector<64x256xf32>
    %c0_7 = arith.constant 0 : index
    %c0_8 = arith.constant 0 : index
    %13 = vector.load %arg14[%c0_7, %c0_8] : memref<64x1024xf32, #tpu.memory_space<vmem>>, vector<64x256xf32>
    tpu.vector_store %arg14[%c0_7, %c0_8], %12 {strides = array<i32>} : memref<64x1024xf32, #tpu.memory_space<vmem>>, vector<64x256xf32>,
    %14 = vector.extract_strided_slice %4 {offsets = [0, 0], sizes = [64, 1], strides = [1, 1]} : vector<64x3xf32> to vector<64x1xf32>
    %cst_9 = arith.constant 0.000000e+00 : f32
    %15 = vector.shape_cast %14 : vector<64x1xf32> to vector<64x1xf32>
    %16 = vector.broadcast %15 : vector<64x1xf32> to vector<64x256xf32>
    %17 = vector.broadcast %cst_9 : f32 to vector<64x256xf32>
    %18 = arith.select %10, %16, %17 : vector<64x256xi1>, vector<64x256xf32>
    %c0_10 = arith.constant 0 : index
    %c256 = arith.constant 256 : index
    %19 = vector.load %arg14[%c0_10, %c256] : memref<64x1024xf32, #tpu.memory_space<vmem>>, vector<64x256xf32>
    tpu.vector_store %arg14[%c0_10, %c256], %18 {strides = array<i32>} : memref<64x1024xf32, #tpu.memory_space<vmem>>, vector<64x256xf32>,
    %20 = vector.extract_strided_slice %4 {offsets = [0, 1], sizes = [64, 1], strides = [1, 1]} : vector<64x3xf32> to vector<64x1xf32>
    %cst_11 = arith.constant 0.000000e+00 : f32
    %21 = vector.shape_cast %20 : vector<64x1xf32> to vector<64x1xf32>
    %22 = vector.broadcast %21 : vector<64x1xf32> to vector<64x256xf32>
    %23 = vector.broadcast %cst_11 : f32 to vector<64x256xf32>
    %24 = arith.select %10, %22, %23 : vector<64x256xi1>, vector<64x256xf32>
    %c0_12 = arith.constant 0 : index
    %c512 = arith.constant 512 : index
    %25 = vector.load %arg14[%c0_12, %c512] : memref<64x1024xf32, #tpu.memory_space<vmem>>, vector<64x256xf32>
    tpu.vector_store %arg14[%c0_12, %c512], %24 {strides = array<i32>} : memref<64x1024xf32, #tpu.memory_space<vmem>>, vector<64x256xf32>,
    %26 = vector.extract_strided_slice %4 {offsets = [0, 2], sizes = [64, 1], strides = [1, 1]} : vector<64x3xf32> to vector<64x1xf32>
    %cst_13 = arith.constant 0.000000e+00 : f32
    %27 = vector.shape_cast %26 : vector<64x1xf32> to vector<64x1xf32>
    %28 = vector.broadcast %27 : vector<64x1xf32> to vector<64x256xf32>
    %29 = vector.broadcast %cst_13 : f32 to vector<64x256xf32>
    %30 = arith.select %10, %28, %29 : vector<64x256xi1>, vector<64x256xf32>
    %c0_14 = arith.constant 0 : index
    %c768 = arith.constant 768 : index
    %31 = vector.load %arg14[%c0_14, %c768] : memref<64x1024xf32, #tpu.memory_space<vmem>>, vector<64x256xf32>
    tpu.vector_store %arg14[%c0_14, %c768], %30 {strides = array<i32>} : memref<64x1024xf32, #tpu.memory_space<vmem>>, vector<64x256xf32>,
    %c0_15 = arith.constant 0 : index
    %c0_16 = arith.constant 0 : index
    %32 = vector.load %arg4[%c0_15, %c0_16] : memref<64x64xf32, #tpu.memory_space<vmem>>, vector<64x64xf32>
    %c0_17 = arith.constant 0 : index
    %c0_18 = arith.constant 0 : index
    %33 = vector.load %arg5[%c0_17, %c0_18] : memref<64x1xf32, #tpu.memory_space<vmem>>, vector<64x1xf32>
    %c0_19 = arith.constant 0 : index
    %c0_20 = arith.constant 0 : index
    %34 = vector.load %arg14[%c0_19, %c0_20] : memref<64x1024xf32, #tpu.memory_space<vmem>>, vector<64x1024xf32>
    %cst_21 = arith.constant dense<0.000000e+00> : vector<64x1024xf32>
    %35 = tpu.matmul %32, %34, %cst_21 {dimension_numbers = #tpu.dot_dimension_numbers<[1], [0], [0], [1], [0, 0, 1, 1], [], []>} : vector<64x64xf32>, vector<64x1024xf32>, vector<64x1024xf32> -> vector<64x1024xf32>
    %36 = vector.extract_strided_slice %35 {offsets = [0, 0], sizes = [64, 256], strides = [1, 1]} : vector<64x1024xf32> to vector<64x256xf32>
    %37 = vector.broadcast %33 : vector<64x1xf32> to vector<64x256xf32>
    %38 = arith.addf %36, %37 : vector<64x256xf32>
    %cst_22 = arith.constant 0.000000e+00 : f32
    %39 = vector.broadcast %cst_22 : f32 to vector<64x256xf32>
    %40 = arith.cmpf ogt, %38, %39 : vector<64x256xf32>
    %cst_23 = arith.constant 0.000000e+00 : f32
    %41 = vector.broadcast %cst_23 : f32 to vector<64x256xf32>
    %42 = arith.select %40, %38, %41 : vector<64x256xi1>, vector<64x256xf32>
    %c0_24 = arith.constant 0 : index
    %c0_25 = arith.constant 0 : index
    %43 = vector.load %arg14[%c0_24, %c0_25] : memref<64x1024xf32, #tpu.memory_space<vmem>>, vector<64x256xf32>
    tpu.vector_store %arg14[%c0_24, %c0_25], %42 {strides = array<i32>} : memref<64x1024xf32, #tpu.memory_space<vmem>>, vector<64x256xf32>,
    %44 = vector.extract_strided_slice %35 {offsets = [0, 256], sizes = [64, 256], strides = [1, 1]} : vector<64x1024xf32> to vector<64x256xf32>
    %cst_26 = arith.constant 0.000000e+00 : f32
    %45 = vector.broadcast %cst_26 : f32 to vector<64x256xf32>
    %46 = arith.select %40, %44, %45 : vector<64x256xi1>, vector<64x256xf32>
    %c0_27 = arith.constant 0 : index
    %c256_28 = arith.constant 256 : index
    %47 = vector.load %arg14[%c0_27, %c256_28] : memref<64x1024xf32, #tpu.memory_space<vmem>>, vector<64x256xf32>
    tpu.vector_store %arg14[%c0_27, %c256_28], %46 {strides = array<i32>} : memref<64x1024xf32, #tpu.memory_space<vmem>>, vector<64x256xf32>,
    %48 = vector.extract_strided_slice %35 {offsets = [0, 512], sizes = [64, 256], strides = [1, 1]} : vector<64x1024xf32> to vector<64x256xf32>
    %cst_29 = arith.constant 0.000000e+00 : f32
    %49 = vector.broadcast %cst_29 : f32 to vector<64x256xf32>
    %50 = arith.select %40, %48, %49 : vector<64x256xi1>, vector<64x256xf32>
    %c0_30 = arith.constant 0 : index
    %c512_31 = arith.constant 512 : index
    %51 = vector.load %arg14[%c0_30, %c512_31] : memref<64x1024xf32, #tpu.memory_space<vmem>>, vector<64x256xf32>
    tpu.vector_store %arg14[%c0_30, %c512_31], %50 {strides = array<i32>} : memref<64x1024xf32, #tpu.memory_space<vmem>>, vector<64x256xf32>,
    %52 = vector.extract_strided_slice %35 {offsets = [0, 768], sizes = [64, 256], strides = [1, 1]} : vector<64x1024xf32> to vector<64x256xf32>
    %cst_32 = arith.constant 0.000000e+00 : f32
    %53 = vector.broadcast %cst_32 : f32 to vector<64x256xf32>
    %54 = arith.select %40, %52, %53 : vector<64x256xi1>, vector<64x256xf32>
    %c0_33 = arith.constant 0 : index
    %c768_34 = arith.constant 768 : index
    %55 = vector.load %arg14[%c0_33, %c768_34] : memref<64x1024xf32, #tpu.memory_space<vmem>>, vector<64x256xf32>
    tpu.vector_store %arg14[%c0_33, %c768_34], %54 {strides = array<i32>} : memref<64x1024xf32, #tpu.memory_space<vmem>>, vector<64x256xf32>,
    %c0_35 = arith.constant 0 : index
    %c0_36 = arith.constant 0 : index
    %56 = vector.load %arg6[%c0_35, %c0_36] : memref<64x64xf32, #tpu.memory_space<vmem>>, vector<64x64xf32>
    %c0_37 = arith.constant 0 : index
    %c0_38 = arith.constant 0 : index
    %57 = vector.load %arg7[%c0_37, %c0_38] : memref<64x3xf32, #tpu.memory_space<vmem>>, vector<64x3xf32>
    %c0_39 = arith.constant 0 : index
    %c0_40 = arith.constant 0 : index
    %58 = vector.load %arg8[%c0_39, %c0_40] : memref<64x1xf32, #tpu.memory_space<vmem>>, vector<64x1xf32>
    %c0_41 = arith.constant 0 : index
    %c0_42 = arith.constant 0 : index
    %59 = vector.load %arg14[%c0_41, %c0_42] : memref<64x1024xf32, #tpu.memory_space<vmem>>, vector<64x1024xf32>
    %cst_43 = arith.constant dense<0.000000e+00> : vector<64x1024xf32>
    %60 = tpu.matmul %56, %59, %cst_43 {dimension_numbers = #tpu.dot_dimension_numbers<[1], [0], [0], [1], [0, 0, 1, 1], [], []>} : vector<64x64xf32>, vector<64x1024xf32>, vector<64x1024xf32> -> vector<64x1024xf32>
    %61 = vector.extract_strided_slice %57 {offsets = [0, 0], sizes = [64, 1], strides = [1, 1]} : vector<64x3xf32> to vector<64x1xf32>
    %62 = vector.broadcast %61 : vector<64x1xf32> to vector<64x256xf32>
    %63 = vector.broadcast %1 : vector<1x256xf32> to vector<64x256xf32>
    %64 = arith.mulf %62, %63 : vector<64x256xf32>
    %65 = vector.extract_strided_slice %57 {offsets = [0, 1], sizes = [64, 1], strides = [1, 1]} : vector<64x3xf32> to vector<64x1xf32>
    %66 = vector.broadcast %65 : vector<64x1xf32> to vector<64x256xf32>
    %67 = vector.broadcast %2 : vector<1x256xf32> to vector<64x256xf32>
    %68 = arith.mulf %66, %67 : vector<64x256xf32>
    %69 = arith.addf %64, %68 : vector<64x256xf32>
    %70 = vector.extract_strided_slice %57 {offsets = [0, 2], sizes = [64, 1], strides = [1, 1]} : vector<64x3xf32> to vector<64x1xf32>
    %71 = vector.broadcast %70 : vector<64x1xf32> to vector<64x256xf32>
    %72 = vector.broadcast %3 : vector<1x256xf32> to vector<64x256xf32>
    %73 = arith.mulf %71, %72 : vector<64x256xf32>
    %74 = arith.addf %69, %73 : vector<64x256xf32>
    %75 = vector.extract_strided_slice %60 {offsets = [0, 0], sizes = [64, 256], strides = [1, 1]} : vector<64x1024xf32> to vector<64x256xf32>
    %76 = arith.addf %75, %74 : vector<64x256xf32>
    %77 = vector.broadcast %58 : vector<64x1xf32> to vector<64x256xf32>
    %78 = arith.addf %76, %77 : vector<64x256xf32>
    %cst_44 = arith.constant 0.000000e+00 : f32
    %79 = vector.broadcast %cst_44 : f32 to vector<64x256xf32>
    %80 = arith.cmpf ogt, %78, %79 : vector<64x256xf32>
    %cst_45 = arith.constant 0.000000e+00 : f32
    %81 = vector.broadcast %cst_45 : f32 to vector<64x256xf32>
    %82 = arith.select %80, %78, %81 : vector<64x256xi1>, vector<64x256xf32>
    %c0_46 = arith.constant 0 : index
    %c0_47 = arith.constant 0 : index
    %83 = vector.load %arg14[%c0_46, %c0_47] : memref<64x1024xf32, #tpu.memory_space<vmem>>, vector<64x256xf32>
    tpu.vector_store %arg14[%c0_46, %c0_47], %82 {strides = array<i32>} : memref<64x1024xf32, #tpu.memory_space<vmem>>, vector<64x256xf32>,
    %84 = vector.extract_strided_slice %60 {offsets = [0, 256], sizes = [64, 256], strides = [1, 1]} : vector<64x1024xf32> to vector<64x256xf32>
    %85 = vector.extract_strided_slice %57 {offsets = [0, 0], sizes = [64, 1], strides = [1, 1]} : vector<64x3xf32> to vector<64x1xf32>
    %86 = vector.broadcast %85 : vector<64x1xf32> to vector<64x256xf32>
    %87 = arith.addf %84, %86 : vector<64x256xf32>
    %cst_48 = arith.constant 0.000000e+00 : f32
    %88 = vector.broadcast %cst_48 : f32 to vector<64x256xf32>
    %89 = arith.select %80, %87, %88 : vector<64x256xi1>, vector<64x256xf32>
    %c0_49 = arith.constant 0 : index
    %c256_50 = arith.constant 256 : index
    %90 = vector.load %arg14[%c0_49, %c256_50] : memref<64x1024xf32, #tpu.memory_space<vmem>>, vector<64x256xf32>
    tpu.vector_store %arg14[%c0_49, %c256_50], %89 {strides = array<i32>} : memref<64x1024xf32, #tpu.memory_space<vmem>>, vector<64x256xf32>,
    %91 = vector.extract_strided_slice %60 {offsets = [0, 512], sizes = [64, 256], strides = [1, 1]} : vector<64x1024xf32> to vector<64x256xf32>
    %92 = vector.extract_strided_slice %57 {offsets = [0, 1], sizes = [64, 1], strides = [1, 1]} : vector<64x3xf32> to vector<64x1xf32>
    %93 = vector.broadcast %92 : vector<64x1xf32> to vector<64x256xf32>
    %94 = arith.addf %91, %93 : vector<64x256xf32>
    %cst_51 = arith.constant 0.000000e+00 : f32
    %95 = vector.broadcast %cst_51 : f32 to vector<64x256xf32>
    %96 = arith.select %80, %94, %95 : vector<64x256xi1>, vector<64x256xf32>
    %c0_52 = arith.constant 0 : index
    %c512_53 = arith.constant 512 : index
    %97 = vector.load %arg14[%c0_52, %c512_53] : memref<64x1024xf32, #tpu.memory_space<vmem>>, vector<64x256xf32>
    tpu.vector_store %arg14[%c0_52, %c512_53], %96 {strides = array<i32>} : memref<64x1024xf32, #tpu.memory_space<vmem>>, vector<64x256xf32>,
    %98 = vector.extract_strided_slice %60 {offsets = [0, 768], sizes = [64, 256], strides = [1, 1]} : vector<64x1024xf32> to vector<64x256xf32>
    %99 = vector.extract_strided_slice %57 {offsets = [0, 2], sizes = [64, 1], strides = [1, 1]} : vector<64x3xf32> to vector<64x1xf32>
    %100 = vector.broadcast %99 : vector<64x1xf32> to vector<64x256xf32>
    %101 = arith.addf %98, %100 : vector<64x256xf32>
    %cst_54 = arith.constant 0.000000e+00 : f32
    %102 = vector.broadcast %cst_54 : f32 to vector<64x256xf32>
    %103 = arith.select %80, %101, %102 : vector<64x256xi1>, vector<64x256xf32>
    %c0_55 = arith.constant 0 : index
    %c768_56 = arith.constant 768 : index
    %104 = vector.load %arg14[%c0_55, %c768_56] : memref<64x1024xf32, #tpu.memory_space<vmem>>, vector<64x256xf32>
    tpu.vector_store %arg14[%c0_55, %c768_56], %103 {strides = array<i32>} : memref<64x1024xf32, #tpu.memory_space<vmem>>, vector<64x256xf32>,
    %c0_57 = arith.constant 0 : index
    %c0_58 = arith.constant 0 : index
    %105 = vector.load %arg9[%c0_57, %c0_58] : memref<64x64xf32, #tpu.memory_space<vmem>>, vector<64x64xf32>
    %c0_59 = arith.constant 0 : index
    %c0_60 = arith.constant 0 : index
    %106 = vector.load %arg10[%c0_59, %c0_60] : memref<64x1xf32, #tpu.memory_space<vmem>>, vector<64x1xf32>
    %c0_61 = arith.constant 0 : index
    %c0_62 = arith.constant 0 : index
    %107 = vector.load %arg14[%c0_61, %c0_62] : memref<64x1024xf32, #tpu.memory_space<vmem>>, vector<64x1024xf32>
    %cst_63 = arith.constant dense<0.000000e+00> : vector<64x1024xf32>
    %108 = tpu.matmul %105, %107, %cst_63 {dimension_numbers = #tpu.dot_dimension_numbers<[1], [0], [0], [1], [0, 0, 1, 1], [], []>} : vector<64x64xf32>, vector<64x1024xf32>, vector<64x1024xf32> -> vector<64x1024xf32>
    %109 = vector.extract_strided_slice %108 {offsets = [0, 0], sizes = [64, 256], strides = [1, 1]} : vector<64x1024xf32> to vector<64x256xf32>
    %110 = vector.broadcast %106 : vector<64x1xf32> to vector<64x256xf32>
    %111 = arith.addf %109, %110 : vector<64x256xf32>
    %cst_64 = arith.constant 0.000000e+00 : f32
    %112 = vector.broadcast %cst_64 : f32 to vector<64x256xf32>
    %113 = arith.cmpf ogt, %111, %112 : vector<64x256xf32>
    %cst_65 = arith.constant 0.000000e+00 : f32
    %114 = vector.broadcast %cst_65 : f32 to vector<64x256xf32>
    %115 = arith.select %113, %111, %114 : vector<64x256xi1>, vector<64x256xf32>
    %c0_66 = arith.constant 0 : index
    %c0_67 = arith.constant 0 : index
    %116 = vector.load %arg14[%c0_66, %c0_67] : memref<64x1024xf32, #tpu.memory_space<vmem>>, vector<64x256xf32>
    tpu.vector_store %arg14[%c0_66, %c0_67], %115 {strides = array<i32>} : memref<64x1024xf32, #tpu.memory_space<vmem>>, vector<64x256xf32>,
    %117 = vector.extract_strided_slice %108 {offsets = [0, 256], sizes = [64, 256], strides = [1, 1]} : vector<64x1024xf32> to vector<64x256xf32>
    %cst_68 = arith.constant 0.000000e+00 : f32
    %118 = vector.broadcast %cst_68 : f32 to vector<64x256xf32>
    %119 = arith.select %113, %117, %118 : vector<64x256xi1>, vector<64x256xf32>
    %c0_69 = arith.constant 0 : index
    %c256_70 = arith.constant 256 : index
    %120 = vector.load %arg14[%c0_69, %c256_70] : memref<64x1024xf32, #tpu.memory_space<vmem>>, vector<64x256xf32>
    tpu.vector_store %arg14[%c0_69, %c256_70], %119 {strides = array<i32>} : memref<64x1024xf32, #tpu.memory_space<vmem>>, vector<64x256xf32>,
    %121 = vector.extract_strided_slice %108 {offsets = [0, 512], sizes = [64, 256], strides = [1, 1]} : vector<64x1024xf32> to vector<64x256xf32>
    %cst_71 = arith.constant 0.000000e+00 : f32
    %122 = vector.broadcast %cst_71 : f32 to vector<64x256xf32>
    %123 = arith.select %113, %121, %122 : vector<64x256xi1>, vector<64x256xf32>
    %c0_72 = arith.constant 0 : index
    %c512_73 = arith.constant 512 : index
    %124 = vector.load %arg14[%c0_72, %c512_73] : memref<64x1024xf32, #tpu.memory_space<vmem>>, vector<64x256xf32>
    tpu.vector_store %arg14[%c0_72, %c512_73], %123 {strides = array<i32>} : memref<64x1024xf32, #tpu.memory_space<vmem>>, vector<64x256xf32>,
    %125 = vector.extract_strided_slice %108 {offsets = [0, 768], sizes = [64, 256], strides = [1, 1]} : vector<64x1024xf32> to vector<64x256xf32>
    %cst_74 = arith.constant 0.000000e+00 : f32
    %126 = vector.broadcast %cst_74 : f32 to vector<64x256xf32>
    %127 = arith.select %113, %125, %126 : vector<64x256xi1>, vector<64x256xf32>
    %c0_75 = arith.constant 0 : index
    %c768_76 = arith.constant 768 : index
    %128 = vector.load %arg14[%c0_75, %c768_76] : memref<64x1024xf32, #tpu.memory_space<vmem>>, vector<64x256xf32>
    tpu.vector_store %arg14[%c0_75, %c768_76], %127 {strides = array<i32>} : memref<64x1024xf32, #tpu.memory_space<vmem>>, vector<64x256xf32>,
    %c0_77 = arith.constant 0 : index
    %c0_78 = arith.constant 0 : index
    %129 = vector.load %arg11[%c0_77, %c0_78] : memref<8x64xf32, #tpu.memory_space<vmem>>, vector<8x64xf32>
    %c0_79 = arith.constant 0 : index
    %c0_80 = arith.constant 0 : index
    %130 = vector.load %arg12[%c0_79, %c0_80] : memref<1x1xf32, #tpu.memory_space<vmem>>, vector<1x1xf32>
    %c0_81 = arith.constant 0 : index
    %c0_82 = arith.constant 0 : index
    %131 = vector.load %arg14[%c0_81, %c0_82] : memref<64x1024xf32, #tpu.memory_space<vmem>>, vector<64x1024xf32>
    %cst_83 = arith.constant dense<0.000000e+00> : vector<8x1024xf32>
    %132 = tpu.matmul %129, %131, %cst_83 {dimension_numbers = #tpu.dot_dimension_numbers<[1], [0], [0], [1], [0, 0, 1, 1], [], []>} : vector<8x64xf32>, vector<64x1024xf32>, vector<8x1024xf32> -> vector<8x1024xf32>
    %133 = vector.extract_strided_slice %132 {offsets = [0, 0], sizes = [1, 1024], strides = [1, 1]} : vector<8x1024xf32> to vector<1x1024xf32>
    %134 = vector.extract_strided_slice %133 {offsets = [0, 0], sizes = [1, 256], strides = [1, 1]} : vector<1x1024xf32> to vector<1x256xf32>
    %135 = vector.broadcast %130 : vector<1x1xf32> to vector<1x256xf32>
    %136 = arith.addf %134, %135 : vector<1x256xf32>
    %c0_84 = arith.constant 0 : index
    %c0_85 = arith.constant 0 : index
    %137 = vector.load %arg13[%c0_84, %c0_85] : memref<1x1024xf32, #tpu.memory_space<vmem>>, vector<1x256xf32>
    tpu.vector_store %arg13[%c0_84, %c0_85], %136 {strides = array<i32>} : memref<1x1024xf32, #tpu.memory_space<vmem>>, vector<1x256xf32>,
    %138 = vector.extract_strided_slice %133 {offsets = [0, 256], sizes = [1, 768], strides = [1, 1]} : vector<1x1024xf32> to vector<1x768xf32>
    %c0_86 = arith.constant 0 : index
    %c256_87 = arith.constant 256 : index
    %139 = vector.load %arg13[%c0_86, %c256_87] : memref<1x1024xf32, #tpu.memory_space<vmem>>, vector<1x768xf32>
    tpu.vector_store %arg13[%c0_86, %c256_87], %138 {strides = array<i32>} : memref<1x1024xf32, #tpu.memory_space<vmem>>, vector<1x768xf32>,
    return
  }
  func.func @transform_0(%arg0: i32) -> (i32, i32) {
    %c0_i32 = arith.constant 0 : i32
    %c0_i32_0 = arith.constant 0 : i32
    return %c0_i32, %arg0 : i32, i32
  }
  func.func @transform_1(%arg0: i32) -> (i32, i32) {
    %c0_i32 = arith.constant 0 : i32
    %c0_i32_0 = arith.constant 0 : i32
    %c0_i32_1 = arith.constant 0 : i32
    return %c0_i32, %c0_i32_0 : i32, i32
  }
  func.func @transform_2(%arg0: i32) -> (i32, i32) {
    %c0_i32 = arith.constant 0 : i32
    %c0_i32_0 = arith.constant 0 : i32
    %c0_i32_1 = arith.constant 0 : i32
    return %c0_i32, %c0_i32_0 : i32, i32
  }
  func.func @transform_3(%arg0: i32) -> (i32, i32) {
    %c0_i32 = arith.constant 0 : i32
    %c0_i32_0 = arith.constant 0 : i32
    %c0_i32_1 = arith.constant 0 : i32
    return %c0_i32, %c0_i32_0 : i32, i32
  }
  func.func @transform_4(%arg0: i32) -> (i32, i32) {
    %c0_i32 = arith.constant 0 : i32
    %c0_i32_0 = arith.constant 0 : i32
    %c0_i32_1 = arith.constant 0 : i32
    return %c0_i32, %c0_i32_0 : i32, i32
  }
  func.func @transform_5(%arg0: i32) -> (i32, i32) {
    %c0_i32 = arith.constant 0 : i32
    %c0_i32_0 = arith.constant 0 : i32
    %c0_i32_1 = arith.constant 0 : i32
    return %c0_i32, %c0_i32_0 : i32, i32
  }
  func.func @transform_6(%arg0: i32) -> (i32, i32) {
    %c0_i32 = arith.constant 0 : i32
    %c0_i32_0 = arith.constant 0 : i32
    %c0_i32_1 = arith.constant 0 : i32
    return %c0_i32, %c0_i32_0 : i32, i32
  }
  func.func @transform_7(%arg0: i32) -> (i32, i32) {
    %c0_i32 = arith.constant 0 : i32
    %c0_i32_0 = arith.constant 0 : i32
    %c0_i32_1 = arith.constant 0 : i32
    return %c0_i32, %c0_i32_0 : i32, i32
  }
  func.func @transform_8(%arg0: i32) -> (i32, i32) {
    %c0_i32 = arith.constant 0 : i32
    %c0_i32_0 = arith.constant 0 : i32
    %c0_i32_1 = arith.constant 0 : i32
    return %c0_i32, %c0_i32_0 : i32, i32
  }
  func.func @transform_9(%arg0: i32) -> (i32, i32) {
    %c0_i32 = arith.constant 0 : i32
    %c0_i32_0 = arith.constant 0 : i32
    %c0_i32_1 = arith.constant 0 : i32
    return %c0_i32, %c0_i32_0 : i32, i32
  }
  func.func @transform_10(%arg0: i32) -> (i32, i32) {
    %c0_i32 = arith.constant 0 : i32
    %c0_i32_0 = arith.constant 0 : i32
    %c0_i32_1 = arith.constant 0 : i32
    return %c0_i32, %c0_i32_0 : i32, i32
  }
  func.func @transform_11(%arg0: i32) -> (i32, i32) {
    %c0_i32 = arith.constant 0 : i32
    %c0_i32_0 = arith.constant 0 : i32
    %c0_i32_1 = arith.constant 0 : i32
    return %c0_i32, %c0_i32_0 : i32, i32
  }
  func.func @transform_12(%arg0: i32) -> (i32, i32) {
    %c0_i32 = arith.constant 0 : i32
    %c0_i32_0 = arith.constant 0 : i32
    return %c0_i32, %arg0 : i32, i32
  }
}

</mosaic_0001>

<bundles_post_ra>
// kernel: tpu_custom_call.1
= control target key start
LH: loop header
LB: loop body
LE: loop exit
PB: predicated region body
PF: predicated region fallthrough
CT: control target
= control target key end

     0   :  { %s6193_s0 = inlined_call_operand.vmem [shape: f32[3,1024], index: 0, kind: input, shape index: {}]   ;;  %s6194_s1 = inlined_call_operand.vmem [shape: f32[64,3], index: 1, kind: input, shape index: {}]   ;;  %s6195_s2 = inlined_call_operand.vmem [shape: f32[64,1], index: 2, kind: input, shape index: {}]   ;;  %s6196_s3 = inlined_call_operand.vmem [shape: f32[64,64], index: 3, kind: input, shape index: {}]   ;;  %s6197_s4 = inlined_call_operand.vmem [shape: f32[64,1], index: 4, kind: input, shape index: {}]   ;;  %s6198_s5 = inlined_call_operand.vmem [shape: f32[64,64], index: 5, kind: input, shape index: {}]   ;;  %s6199_s6 = inlined_call_operand.vmem [shape: f32[64,3], index: 6, kind: input, shape index: {}]   ;;  %s6200_s7 = inlined_call_operand.vmem [shape: f32[64,1], index: 7, kind: input, shape index: {}]   ;;  %s6201_s8 = inlined_call_operand.vmem [shape: f32[64,64], index: 8, kind: input, shape index: {}]   ;;  %s6202_s9 = inlined_call_operand.vmem [shape: f32[64,1], index: 9, kind: input, shape index: {}]   ;;  %s6203_s10 = inlined_call_operand.vmem [shape: f32[8,64], index: 10, kind: input, shape index: {}]   ;;  %s6204_s11 = inlined_call_operand.<no memory space> [shape: f32[1,1], index: 11, kind: input, shape index: {}]   ;;  %s6205_s12 = inlined_call_operand.hbm [shape: f32[1,4096], index: 12, kind: output, shape index: {}]  }
   0x1   :  { %v17_v0 = vstv %s6204_s11 }
   0x2   :  { %18 = vst [vmem:[#allocation3] sm:$0x1] %v17_v0 }
   0x3   :  { %19 = vsyncpa [#allocation5], 0 }
   0x4   :  { %21 = vsyncpa [#allocation5 + $0x1], 0  ;;  %s4036_s23 = smov 0   ;;  %s4038_s24 = smov 0  }
   0x5   :  { %s4040_s25 = smov 0   ;;  %s4042_s26 = smov 0  }
   0x6 LB: > { %s4057_s11 = sadd.s32 4294967295, %s3963_s26   ;;  %s3347_s27 = sadd.s32 4294967294, %s3963_s26   ;;  %s3963_s26 = sphi %s4042_s26, %s6356_s26   ;;  %s3959_s25 = sphi %s4040_s25, %s6355_s25   ;;  %s3955_s24 = sphi %s4038_s24, %s6354_s24   ;;  %s3951_s23 = sphi %s4036_s23, %s6353_s23  }
   0x7   : > { %s4061_s28 = sadd.s32 1, %s3963_s26   ;;  %s291_s29 = sadd.s32 1, %s3959_s25 }
   0x8   : > { %s288_s30 = ssub.s32 %s3963_s26, %s4061_s28  ;;  %p301_p0 = scmp.ne.s32.totalorder %s3959_s25, %s3955_s24 }
   0x9   : > { %p289_p1 = scmp.eq.s32.totalorder %s288_s30, 0  ;;  %p302_p2 = scmp.eq.s32.totalorder %s4057_s11, 3 }
   0xa   : > { %p307_p3 = scmp.ne.s32.totalorder %s3955_s24, %s3951_s23  ;;  %p308_p4 = scmp.eq.s32.totalorder %s3347_s27, 3 }
   0xb   : > { %s4072_s13 = scalar_select %p289_p1, %s3959_s25, %s291_s29  }
   0xc   : > { %p4074_p5 = por %p302_p2, %p301_p0  ;;  %p4078_p6 = por %p308_p4, %p307_p3 }
   0xd   : > { %6258 = sst [smem:[#allocation7_spill]] %s4072_s13  ;;  %p3350_p7 = scmp.ge.s32.totalorder %s3963_s26, 1 }
   0xe   : > { %p368_p8 = scmp.lt.s32.totalorder %s3963_s26, 5 }
  0x10   : > { %p369_p9 = pnand %p3350_p7, %p368_p8 }
  0x12   : > { %372 = sbr.rel (%p369_p9) target bundleno = 1086 (0x43e), region = 68 }
  0x17   : > { %v431_v1 = vld [vmem:[%s6195_s2 + $0x28] sm:$0xff]  ;;  %s3352_s18 = sshll.u32 %s4057_s11, 1  ;;  %v3965_v2 = vmov 0   ;;  %v433_v3 = vld [vmem:[%s6195_s2 + $0x38] sm:$0xff]  ;;  %v430_v5 = vld [vmem:[%s6195_s2 + $0x20] sm:$0xff]  ;;  %vm6206_vm0 = vcmask 1042432  }
  0x18   : > { %3875 = vset.pattern.permute.xlu1 %v3965_v2  ;;  %p411_p10 = scmp.lt.s32.totalorder %s3352_s18, 7  ;;  %3874 = vset.pattern.permute.xlu0 %v3965_v2  ;;  %v432_v6 = vld [vmem:[%s6195_s2 + $0x30] sm:$0xff]  ;;  %v418_v7 = vld [vmem:[%s6194_s1] sm:$0xff]  ;;  %vm478_vm1 = vcmask 23552   ;;  %v427_v9 = vld [vmem:[%s6195_s2 + $0x8] sm:$0xff]  ;;  %v3966_v21 = vmov 1  }
  0x19   : > { %461 = vperm.xlu1 %3875, %v431_v1   ;;  %471 = vperm.xlu0 %3874, %v433_v3   ;;  %v426_v8 = vld [vmem:[%s6195_s2] sm:$0xff]  ;;  %v429_v12 = vld [vmem:[%s6195_s2 + $0x18] sm:$0xff]  ;;  %v419_v13 = vld [vmem:[%s6194_s1 + $0x8] sm:$0xff]  ;;  %v3967_v22 = vmov 2   ;;  %s407_s13 = sand.u32 1, %s3955_s24   ;;  %s3573_s16 = sshll.u32 %s4057_s11, 3 }
  0x1a   : > { %s6358_s18 = smov (!%p411_p10, %s3352_s18), 7  ;;  %3876 = vset.pattern.permute.xlu2 %v3965_v2  ;;  %v423_v14 = vld [vmem:[%s6194_s1 + $0x28] sm:$0xff]  ;;  %v424_v15 = vld [vmem:[%s6194_s1 + $0x30] sm:$0xff]  ;;  %v421_v18 = vld [vmem:[%s6194_s1 + $0x18] sm:$0xff]  ;;  %s3283_s19 = scalar_lea.hbm %s6205_s12, %s3573_s16 }
  0x1b   : > { %s3353_s21 = sshll.u32 %s6358_s18, 2  ;;  %451 = vperm.xlu2 %3876, %v429_v12   ;;  %v428_v16 = vld [vmem:[%s6195_s2 + $0x10] sm:$0xff]  ;;  %v425_v19 = vld [vmem:[%s6194_s1 + $0x38] sm:$0xff]  ;;  %v422_v20 = vld [vmem:[%s6194_s1 + $0x20] sm:$0xff]  ;;  %s3273_s11 = scalar_lea.sflag [#allocation5], %s407_s13 }
  0x1c   : > { %s414_s29 = scalar_lea.vmem %s6193_s0, %s3353_s21  ;;  %v420_v17 = vld [vmem:[%s6194_s1 + $0x10] sm:$0xff]  ;;  %v843_v63 = vld [vmem:[%s6197_s4 + $0x28] sm:$0xff]  ;;  %s3287_s21 = sshll.u32 %s3283_s19, 4  ;;  %s3288_s21 = int_to_ptr.hbm [resolvable:$true] %s3287_s21 }
  0x1d   : > { %v4097_v4 = vld [vmem:[%s414_s29] sm:$0x77]  ;;  %s3351_s29 = sshll.u32 %s407_s13, 3  ;;  %s3915_s22 = sshra.s32 %s3288_s21, 4  ;;  %s3916_s22 = int_to_ptr.hbm [resolvable:$true] %s3915_s22 }
  0x1e   : > { %475 = vst [vmem:[#allocation1] ss:$2 sm:$0xff] %v4097_v4  ;;  %s409_s30 = scalar_lea.vmem [#allocation4], %s3351_s29  ;;  %s3917_s27 = scalar_lea.hbm %s3916_s22, 8 }
  0x1f   : > { %s3285_s20 = sshll.u32 %s409_s30, 4  ;;  %p3918_p11 = scmp.ne.s32.totalorder %s3916_s22, %s3917_s27  ;;  %s3286_s20 = int_to_ptr.vmem [resolvable:$true] %s3285_s20 }
  0x20   : > { %s3921_s17 = scalar_lea.hbm %s6205_s12, 32  ;;  %p3922_p0 = scmp.lt.s32.totalorder %s3916_s22, %s6205_s12 }
  0x21   : > { %456 = vperm.xlu1 %3875, %v430_v5   ;;  %466 = vperm.xlu0 %3874, %v432_v6   ;;  %p3919_p12 = pnand %p3918_p11, %p4074_p5  ;;  %p3923_p1 = scmp.lt.s32.totalorder %s3921_s17, %s3917_s27 }
  0x23   : > { %446 = vperm.xlu2 %3876, %v428_v16   ;;  %p3920_p13 = pneg %p3919_p12  ;;  %p3924_p2 = por %p3923_p1, %p3922_p0 }
  0x25   : > { %v476_v10 = vld.sshfl [vmem:[#allocation1] sm:$0xff pattern:$0x75316420]  ;;  %v477_v11 = vld.sshfl [vmem:[#allocation1 + $0x8] sm:$0xff pattern:$0x75316420]  ;;  %p3925_p3 = pnand %p3924_p2, %p3920_p13 }
  0x26   : > { %3354 = vmatpush.msk.msra.mxu0 %vm6206_vm0, %v476_v10  ;;  %3363 = vmatpush.msk.msra.mxu1 %vm6206_vm0, %v477_v11 }
  0x27   : > { %3355 = vmatmul.msk.f32.vlgmr.msra.gmra.mxu0 %vm478_vm1, %v418_v7  ;;  %3364 = vmatmul.msk.f32.vlgmr.msra.gmra.mxu1 %vm478_vm1, %v418_v7 }
  0x29   : > { %436 = vperm.xlu1 %3875, %v426_v8   ;;  %441 = vperm.xlu0 %3874, %v427_v9  }
  0x2b   : > { %667 = vperm.xlu2 %3876, %v425_v19  }
  0x2f   : > { %3356 = vmatmul.msk.f32.gmra.mxu0 %vm478_vm1, %v419_v13  ;;  %3365 = vmatmul.msk.f32.gmra.mxu1 %vm478_vm1, %v419_v13 }
  0x31   : > { %659 = vperm.xlu1 %3875, %v423_v14   ;;  %663 = vperm.xlu0 %3874, %v424_v15  }
  0x33   : > { %655 = vperm.xlu2 %3876, %v422_v20  }
  0x37   : > { %3357 = vmatmul.msk.f32.gmra.mxu0 %vm478_vm1, %v420_v17  ;;  %3366 = vmatmul.msk.f32.gmra.mxu1 %vm478_vm1, %v420_v17 }
  0x39   : > { %647 = vperm.xlu1 %3875, %v420_v17   ;;  %651 = vperm.xlu0 %3874, %v421_v18  }
  0x3b   : > { %643 = vperm.xlu2 %3876, %v419_v13  }
  0x3f   : > { %3358 = vmatmul.msk.f32.gmra.mxu0 %vm478_vm1, %v421_v18  ;;  %3367 = vmatmul.msk.f32.gmra.mxu1 %vm478_vm1, %v421_v18 }
  0x41   : > { %3877 = vset.pattern.permute.xlu1 %v3966_v21  ;;  %639 = vperm.xlu0 %3874, %v418_v7  }
  0x42   : > { %731 = vperm.xlu1 %3877, %v425_v19  }
  0x43   : > { %3878 = vset.pattern.permute.xlu2 %v3966_v21 }
  0x44   : > { %727 = vperm.xlu2 %3878, %v424_v15  }
  0x47   : > { %3359 = vmatmul.msk.f32.gmra.mxu0 %vm478_vm1, %v422_v20  ;;  %3368 = vmatmul.msk.f32.gmra.mxu1 %vm478_vm1, %v422_v20 }
  0x49   : > { %3879 = vset.pattern.permute.xlu0 %v3966_v21 }
  0x4a   : > { %719 = vperm.xlu1 %3877, %v422_v20   ;;  %723 = vperm.xlu0 %3879, %v423_v14  }
  0x4c   : > { %715 = vperm.xlu2 %3878, %v421_v18  }
  0x4f   : > { %3360 = vmatmul.msk.f32.gmra.mxu0 %vm478_vm1, %v423_v14  ;;  %3369 = vmatmul.msk.f32.gmra.mxu1 %vm478_vm1, %v423_v14 }
  0x52   : > { %711 = vperm.xlu1 %3877, %v420_v17   ;;  %703 = vperm.xlu0 %3879, %v418_v7  }
  0x54   : > { %707 = vperm.xlu2 %3878, %v419_v13  }
  0x57   : > { %3361 = vmatmul.msk.f32.gmra.mxu0 %vm478_vm1, %v424_v15  ;;  %3370 = vmatmul.msk.f32.gmra.mxu1 %vm478_vm1, %v424_v15 }
  0x5a   : > { %3880 = vset.pattern.permute.xlu1 %v3967_v22  ;;  %3882 = vset.pattern.permute.xlu0 %v3967_v22 }
  0x5b   : > { %795 = vperm.xlu1 %3880, %v425_v19   ;;  %787 = vperm.xlu0 %3882, %v423_v14  }
  0x5c   : > { %3881 = vset.pattern.permute.xlu2 %v3967_v22 }
  0x5d   : > { %791 = vperm.xlu2 %3881, %v424_v15  }
  0x5f   : > { %3362 = vmatmul.msk.f32.gmra.mxu0 %vm478_vm1, %v425_v19  ;;  %3371 = vmatmul.msk.f32.gmra.mxu1 %vm478_vm1, %v425_v19 }
  0x63   : > { %783 = vperm.xlu1 %3880, %v422_v20   ;;  %767 = vperm.xlu0 %3882, %v418_v7   ;;  %v4343_v20 = vld [vmem:[%s6196_s3] sm:$0xff] }
  0x65   : > { %779 = vperm.xlu2 %3881, %v421_v18  }
  0x6b   : > { %775 = vperm.xlu1 %3880, %v420_v17   ;;  %3885 = vset.pattern.permute.xlu0 %v3965_v2 }
  0x6c   : > { %1290 = vperm.xlu0 %3885, %v843_v63  }
  0x6d   : > { %771 = vperm.xlu2 %3881, %v419_v13  }
  0x73   : > { %3883 = vset.pattern.permute.xlu1 %v3965_v2 }
  0x75   : > { %3884 = vset.pattern.permute.xlu2 %v3965_v2  ;;  %v452_v24 = vpop.permute.xlu2 %451 }
  0x7d   : > { %v4169_v26 = vpop.permute.xlu2 %446 }
  0x85   : > { %v668_v33 = vpop.permute.xlu2 %667 }
  0x8b   : > { %v462_v23 = vpop.permute.xlu1 %461  ;;  %v472_v29 = vpop.permute.xlu0 %471 }
  0x8d   : > { %v4181_v38 = vpop.permute.xlu2 %655 }
  0x93   : > { %v457_v25 = vpop.permute.xlu1 %456  ;;  %v467_v34 = vpop.permute.xlu0 %466 }
  0x95   : > { %v4185_v43 = vpop.permute.xlu2 %643 }
  0x9b   : > { %v4179_v32 = vpop.permute.xlu1 %436  ;;  %v442_v39 = vpop.permute.xlu0 %441 }
  0x9e   : > { %v4189_v48 = vpop.permute.xlu2 %727 }
  0xa3   : > { %v660_v37 = vpop.permute.xlu1 %659  ;;  %v664_v44 = vpop.permute.xlu0 %663 }
  0xa4   : > { %v4171_v27 = vpop.f32.mrf.mxu0  ;;  %v4173_v28 = vpop.f32.mrf.mxu1 }
  0xa5   : > { %v4298_v16 = vadd.f32 %v4171_v27, %v4179_v32  ;;  %v4302_v17 = vadd.f32 %v4173_v28, %v4179_v32  ;;  %v838_v32 = vld [vmem:[%s6197_s4] sm:$0xff] }
  0xa6   : > { %v4193_v55 = vpop.permute.xlu2 %715  ;;  %1265 = vperm.xlu0 %3885, %v838_v32  }
  0xa7   : > { %vm590_vm1 = vcmp.gt.f32.partialorder %v4298_v16, 0.0  ;;  %vm591_vm0 = vcmp.gt.f32.partialorder %v4302_v17, 0.0 }
  0xab   : > { %v4183_v42 = vpop.permute.xlu1 %647  ;;  %v652_v51 = vpop.permute.xlu0 %651 }
  0xac   : > { %v4175_v30 = vpop.f32.mrf.mxu0  ;;  %v4177_v31 = vpop.f32.mrf.mxu1 }
  0xad   : > { %v4277_v13 = vadd.f32 %v4175_v30, %v442_v39  ;;  %v4280_v14 = vadd.f32 %v4177_v31, %v442_v39  ;;  %v4451_v30 = vld [vmem:[%s6196_s3 + $0x10] sm:$0xff]  ;;  %v845_v31 = vld [vmem:[%s6197_s4 + $0x38] sm:$0xff] }
  0xae   : > { %v4222_v5 = vpop.permute.xlu2 %707  ;;  %1300 = vperm.xlu1 %3883, %v845_v31   ;;  %v840_v39 = vld [vmem:[%s6197_s4 + $0x10] sm:$0xff] }
  0xaf   : > { %vm592_vm14 = vcmp.gt.f32.partialorder %v4277_v13, 0.0  ;;  %vm593_vm15 = vcmp.gt.f32.partialorder %v4280_v14, 0.0 }
  0xb3   : > { %v4195_v56 = vpop.permute.xlu0 %639 }
  0xb4   : > { %v531_v35 = vpop.f32.mrf.mxu0  ;;  %v572_v36 = vpop.f32.mrf.mxu1 }
  0xb5   : > { %v4187_v47 = vpop.permute.xlu1 %731  ;;  %v4259_v11 = vadd.f32 %v531_v35, %v4169_v26  ;;  %v4262_v12 = vadd.f32 %v572_v36, %v4169_v26  ;;  %v4398_v26 = vld [vmem:[%s6196_s3 + $0x8] sm:$0xff]  ;;  %v842_v35 = vld [vmem:[%s6197_s4 + $0x20] sm:$0xff]  ;;  %v1477_v36 = vld [vmem:[%s6199_s6 + $0x30] sm:$0xff] }
  0xb6   : > { %1285 = vperm.xlu1 %3883, %v842_v35   ;;  %1935 = vperm.xlu0 %3885, %v1477_v36  }
  0xb7   : > { %vm594_vm12 = vcmp.gt.f32.partialorder %v4259_v11, 0.0  ;;  %vm6207_vm13 = vcmp.gt.f32.partialorder %v4262_v12, 0.0  ;;  %v792_v18 = vpop.permute.xlu2 %791 }
  0xbc   : > { %v534_v40 = vpop.f32.mrf.mxu0  ;;  %v575_v41 = vpop.f32.mrf.mxu1 }
  0xbd   : > { %v4191_v52 = vpop.permute.xlu1 %719  ;;  %v4224_v6 = vpop.permute.xlu0 %723  ;;  %v4242_v9 = vadd.f32 %v534_v40, %v452_v24  ;;  %v4244_v10 = vadd.f32 %v575_v41, %v452_v24  ;;  %v1476_v40 = vld [vmem:[%s6199_s6 + $0x28] sm:$0xff] }
  0xbe   : > { %v839_v41 = vld [vmem:[%s6197_s4 + $0x8] sm:$0xff]  ;;  %1275 = vperm.xlu1 %3883, %v840_v39   ;;  %1930 = vperm.xlu0 %3885, %v1476_v40  }
  0xbf   : > { %vm596_vm10 = vcmp.gt.f32.partialorder %v4242_v9, 0.0  ;;  %vm597_vm11 = vcmp.gt.f32.partialorder %v4244_v10, 0.0  ;;  %v780_v24 = vpop.permute.xlu2 %779 }
  0xc4   : > { %v537_v45 = vpop.f32.mrf.mxu0  ;;  %v578_v46 = vpop.f32.mrf.mxu1 }
  0xc5   : > { %v4208_v0 = vpop.permute.xlu1 %711  ;;  %v4226_v7 = vadd.f32 %v537_v45, %v457_v25  ;;  %v4228_v8 = vadd.f32 %v578_v46, %v457_v25  ;;  %v4310_v19 = vpop.permute.xlu0 %703  ;;  %v836_v45 = vld [vmem:[%s6196_s3 + $0x30] sm:$0xff]  ;;  %v1474_v46 = vld [vmem:[%s6199_s6 + $0x18] sm:$0xff] }
  0xc7   : > { %vm598_vm8 = vcmp.gt.f32.partialorder %v4226_v7, 0.0  ;;  %vm599_vm9 = vcmp.gt.f32.partialorder %v4228_v8, 0.0  ;;  %v772_v28 = vpop.permute.xlu2 %771 }
  0xcc   : > { %v540_v49 = vpop.f32.mrf.mxu0  ;;  %v581_v50 = vpop.f32.mrf.mxu1 }
  0xcd   : > { %v4210_v1 = vadd.f32 %v540_v49, %v462_v23  ;;  %v4212_v3 = vadd.f32 %v581_v50, %v462_v23  ;;  %v796_v15 = vpop.permute.xlu1 %795  ;;  %v788_v25 = vpop.permute.xlu0 %787  ;;  %v1484_v49 = vld [vmem:[%s6200_s7 + $0x28] sm:$0xff] }
  0xcf   : > { %vm600_vm6 = vcmp.gt.f32.partialorder %v4210_v1, 0.0  ;;  %vm601_vm7 = vcmp.gt.f32.partialorder %v4212_v3, 0.0 }
  0xd4   : > { %v543_v53 = vpop.f32.mrf.mxu0  ;;  %v584_v54 = vpop.f32.mrf.mxu1 }
  0xd5   : > { %v4197_v59 = vadd.f32 %v543_v53, %v467_v34  ;;  %v4199_v60 = vadd.f32 %v584_v54, %v467_v34  ;;  %v784_v23 = vpop.permute.xlu1 %783  ;;  %v4483_v34 = vld [vmem:[%s6196_s3 + $0x18] sm:$0xff] }
  0xd7   : > { %vm602_vm4 = vcmp.gt.f32.partialorder %v4197_v59, 0.0  ;;  %vm603_vm5 = vcmp.gt.f32.partialorder %v4199_v60, 0.0 }
  0xdc   : > { %v546_v57 = vpop.f32.mrf.mxu0  ;;  %v587_v58 = vpop.f32.mrf.mxu1 }
  0xdd   : > { %v4201_v61 = vadd.f32 %v546_v57, %v472_v29  ;;  %v4203_v62 = vadd.f32 %v587_v58, %v472_v29  ;;  %v776_v27 = vpop.permute.xlu1 %775  ;;  %v768_v29 = vpop.permute.xlu0 %767 }
  0xdf   : > { %vm604_vm2 = vcmp.gt.f32.partialorder %v4201_v61, 0.0  ;;  %vm605_vm3 = vcmp.gt.f32.partialorder %v4203_v62, 0.0 }
  0xe0   : > { %3576 = vmatpush.msk.msra.mxu2 %vm604_vm2, %v4201_v61  ;;  %3584 = vmatpush.msk.msra.mxu3 %vm605_vm3, %v4203_v62  ;;  %v1473_v62 = vld [vmem:[%s6199_s6 + $0x10] sm:$0xff] }
  0xe1   : > { %3592 = vmatpush.msk.msrb.mxu0 %vm604_vm2, %v668_v33  ;;  %3600 = vmatpush.msk.msrb.mxu1 %vm605_vm3, %v668_v33  ;;  %v844_v33 = vld [vmem:[%s6197_s4 + $0x30] sm:$0xff] }
  0xe2   : > { %3577 = vmatpush.msk.msra.mxu2 %vm602_vm4, %v4197_v59  ;;  %3585 = vmatpush.msk.msra.mxu3 %vm603_vm5, %v4199_v60 }
  0xe3   : > { %3593 = vmatpush.msk.msrb.mxu0 %vm602_vm4, %v664_v44  ;;  %3601 = vmatpush.msk.msrb.mxu1 %vm603_vm5, %v664_v44  ;;  %v1475_v44 = vld [vmem:[%s6199_s6 + $0x20] sm:$0xff] }
  0xe4   : > { %3578 = vmatpush.msk.msra.mxu2 %vm600_vm6, %v4210_v1  ;;  %3586 = vmatpush.msk.msra.mxu3 %vm601_vm7, %v4212_v3 }
  0xe5   : > { %3594 = vmatpush.msk.msrb.mxu0 %vm600_vm6, %v660_v37  ;;  %3602 = vmatpush.msk.msrb.mxu1 %vm601_vm7, %v660_v37  ;;  %v841_v37 = vld [vmem:[%s6197_s4 + $0x18] sm:$0xff] }
  0xe6   : > { %3579 = vmatpush.msk.msra.mxu2 %vm598_vm8, %v4226_v7  ;;  %3587 = vmatpush.msk.msra.mxu3 %vm599_vm9, %v4228_v8 }
  0xe7   : > { %3595 = vmatpush.msk.msrb.mxu0 %vm598_vm8, %v4181_v38  ;;  %3603 = vmatpush.msk.msrb.mxu1 %vm599_vm9, %v4181_v38  ;;  %v4505_v38 = vld [vmem:[%s6196_s3 + $0x20] sm:$0xff] }
  0xe8   : > { %3580 = vmatpush.msk.msra.mxu2 %vm596_vm10, %v4242_v9  ;;  %3588 = vmatpush.msk.msra.mxu3 %vm597_vm11, %v4244_v10 }
  0xe9   : > { %3596 = vmatpush.msk.msrb.mxu0 %vm596_vm10, %v652_v51  ;;  %3604 = vmatpush.msk.msrb.mxu1 %vm597_vm11, %v652_v51 }
  0xea   : > { %3581 = vmatpush.msk.msra.mxu2 %vm594_vm12, %v4259_v11  ;;  %3589 = vmatpush.msk.msra.mxu3 %vm6207_vm13, %v4262_v12 }
  0xeb   : > { %3597 = vmatpush.msk.msrb.mxu0 %vm594_vm12, %v4183_v42  ;;  %3605 = vmatpush.msk.msrb.mxu1 %vm6207_vm13, %v4183_v42  ;;  %vm910_vm13 = vcmask 523264   ;;  %v4527_v42 = vld [vmem:[%s6196_s3 + $0x28] sm:$0xff] }
  0xec   : > { %3582 = vmatpush.msk.msra.mxu2 %vm592_vm14, %v4277_v13  ;;  %3590 = vmatpush.msk.msra.mxu3 %vm593_vm15, %v4280_v14 }
  0xed   : > { %3598 = vmatpush.msk.msrb.mxu0 %vm592_vm14, %v4185_v43  ;;  %3606 = vmatpush.msk.msrb.mxu1 %vm593_vm15, %v4185_v43  ;;  %v1478_v43 = vld [vmem:[%s6199_s6 + $0x38] sm:$0xff] }
  0xee   : > { %3583 = vmatpush.msk.msra.mxu2 %vm590_vm1, %v4298_v16  ;;  %3591 = vmatpush.msk.msra.mxu3 %vm591_vm0, %v4302_v17 }
  0xef   : > { %3599 = vmatpush.msk.msrb.mxu0 %vm590_vm1, %v4195_v56  ;;  %3607 = vmatpush.msk.msrb.mxu1 %vm591_vm0, %v4195_v56 }
  0xf0   : > { %3372 = vmatmul.msk.f32.vlgmr.msra.gmra.mxu2 %vm910_vm13, %v4343_v20  ;;  %3380 = vmatmul.msk.f32.vlgmr.msra.gmra.mxu3 %vm910_vm13, %v4343_v20 }
  0xf1   : > { %3388 = vmatmul.msk.f32.vlgmr.msrb.gmra.mxu0 %vm910_vm13, %v4343_v20  ;;  %3396 = vmatmul.msk.f32.vlgmr.msrb.gmra.mxu1 %vm910_vm13, %v4343_v20 }
  0xf2   : > { %3608 = vmatpush.msk.msrb.mxu2 %vm604_vm2, %v4187_v47  ;;  %3616 = vmatpush.msk.msrb.mxu3 %vm605_vm3, %v4187_v47  ;;  %v837_v47 = vld [vmem:[%s6196_s3 + $0x38] sm:$0xff] }
  0xf3   : > { %3624 = vmatpush.msk.msra.mxu0 %vm604_vm2, %v796_v15  ;;  %3632 = vmatpush.msk.msra.mxu1 %vm605_vm3, %v796_v15  ;;  %vm6261_vm2 = vcmp.gt.f32.partialorder %v4262_v12, 0.0  ;;  %v1472_v12 = vld [vmem:[%s6199_s6 + $0x8] sm:$0xff] }
  0xf4   : > { %3609 = vmatpush.msk.msrb.mxu2 %vm602_vm4, %v4189_v48  ;;  %3617 = vmatpush.msk.msrb.mxu3 %vm603_vm5, %v4189_v48  ;;  %vm6262_vm3 = vmmov %vm6261_vm2  ;;  %v1486_v48 = vld [vmem:[%s6200_s7 + $0x38] sm:$0xff] }
  0xf5   : > { %3625 = vmatpush.msk.msra.mxu0 %vm602_vm4, %v792_v18  ;;  %3633 = vmatpush.msk.msra.mxu1 %vm603_vm5, %v792_v18 }
  0xf6   : > { %3610 = vmatpush.msk.msrb.mxu2 %vm600_vm6, %v4224_v6  ;;  %3618 = vmatpush.msk.msrb.mxu3 %vm601_vm7, %v4224_v6 }
  0xf7   : > { %3626 = vmatpush.msk.msra.mxu0 %vm600_vm6, %v788_v25  ;;  %3634 = vmatpush.msk.msra.mxu1 %vm601_vm7, %v788_v25 }
  0xf8   : > { %3611 = vmatpush.msk.msrb.mxu2 %vm598_vm8, %v4191_v52  ;;  %3619 = vmatpush.msk.msrb.mxu3 %vm599_vm9, %v4191_v52 }
  0xf9   : > { %3627 = vmatpush.msk.msra.mxu0 %vm598_vm8, %v784_v23  ;;  %3635 = vmatpush.msk.msra.mxu1 %vm599_vm9, %v784_v23 }
  0xfa   : > { %3373 = vmatmul.msk.f32.gmra.mxu2 %vm910_vm13, %v4398_v26  ;;  %3381 = vmatmul.msk.f32.gmra.mxu3 %vm910_vm13, %v4398_v26 }
  0xfb   : > { %3389 = vmatmul.msk.f32.gmra.mxu0 %vm910_vm13, %v4398_v26  ;;  %3397 = vmatmul.msk.f32.gmra.mxu1 %vm910_vm13, %v4398_v26 }
  0xfc   : > { %3612 = vmatpush.msk.msrb.mxu2 %vm596_vm10, %v4193_v55  ;;  %3620 = vmatpush.msk.msrb.mxu3 %vm597_vm11, %v4193_v55 }
  0xfd   : > { %3628 = vmatpush.msk.msra.mxu0 %vm596_vm10, %v780_v24  ;;  %3636 = vmatpush.msk.msra.mxu1 %vm597_vm11, %v780_v24 }
  0xfe   : > { %3613 = vmatpush.msk.msrb.mxu2 %vm594_vm12, %v4208_v0  ;;  %3621 = vmatpush.msk.msrb.mxu3 %vm6261_vm2, %v4208_v0 }
  0xff   : > { %3629 = vmatpush.msk.msra.mxu0 %vm594_vm12, %v776_v27  ;;  %3637 = vmatpush.msk.msra.mxu1 %vm6262_vm3, %v776_v27 }
 0x100   : > { %3614 = vmatpush.msk.msrb.mxu2 %vm592_vm14, %v4222_v5  ;;  %3622 = vmatpush.msk.msrb.mxu3 %vm593_vm15, %v4222_v5  ;;  %v1485_v5 = vld [vmem:[%s6200_s7 + $0x30] sm:$0xff] }
 0x101   : > { %3630 = vmatpush.msk.msra.mxu0 %vm592_vm14, %v772_v28  ;;  %3638 = vmatpush.msk.msra.mxu1 %vm593_vm15, %v772_v28  ;;  %v1291_v28 = vpop.permute.xlu0 %1290 }
 0x102   : > { %3615 = vmatpush.msk.msrb.mxu2 %vm590_vm1, %v4310_v19  ;;  %3623 = vmatpush.msk.msrb.mxu3 %vm591_vm0, %v4310_v19  ;;  %v1471_v19 = vld [vmem:[%s6199_s6] sm:$0xff] }
 0x103   : > { %3631 = vmatpush.msk.msra.mxu0 %vm590_vm1, %v768_v29  ;;  %3639 = vmatpush.msk.msra.mxu1 %vm591_vm0, %v768_v29 }
 0x104   : > { %3374 = vmatmul.msk.f32.gmra.mxu2 %vm910_vm13, %v4451_v30  ;;  %3382 = vmatmul.msk.f32.gmra.mxu3 %vm910_vm13, %v4451_v30 }
 0x105   : > { %3390 = vmatmul.msk.f32.gmra.mxu0 %vm910_vm13, %v4451_v30  ;;  %3398 = vmatmul.msk.f32.gmra.mxu1 %vm910_vm13, %v4451_v30 }
 0x106   : > { %1295 = vperm.xlu2 %3884, %v844_v33   ;;  %1940 = vperm.xlu1 %3883, %v1478_v43  }
 0x107   : > { %1925 = vperm.xlu0 %3885, %v1475_v44  }
 0x10c   : > { %3375 = vmatmul.msk.f32.gmra.mxu2 %vm910_vm13, %v4483_v34  ;;  %3383 = vmatmul.msk.f32.gmra.mxu3 %vm910_vm13, %v4483_v34 }
 0x10d   : > { %3391 = vmatmul.msk.f32.gmra.mxu0 %vm910_vm13, %v4483_v34  ;;  %3399 = vmatmul.msk.f32.gmra.mxu1 %vm910_vm13, %v4483_v34 }
 0x10e   : > { %1280 = vperm.xlu2 %3884, %v841_v37   ;;  %3887 = vset.pattern.permute.xlu1 %v3966_v21 }
 0x10f   : > { %1920 = vperm.xlu0 %3885, %v1474_v46   ;;  %1990 = vperm.xlu1 %3887, %v1477_v36  }
 0x114   : > { %3376 = vmatmul.msk.f32.gmra.mxu2 %vm910_vm13, %v4505_v38  ;;  %3384 = vmatmul.msk.f32.gmra.mxu3 %vm910_vm13, %v4505_v38 }
 0x115   : > { %3392 = vmatmul.msk.f32.gmra.mxu0 %vm910_vm13, %v4505_v38  ;;  %3400 = vmatmul.msk.f32.gmra.mxu1 %vm910_vm13, %v4505_v38 }
 0x116   : > { %1270 = vperm.xlu2 %3884, %v839_v41  }
 0x117   : > { %2158 = vperm.xlu0 %3885, %v1486_v48   ;;  %1986 = vperm.xlu1 %3887, %v1476_v40  }
 0x11c   : > { %3377 = vmatmul.msk.f32.gmra.mxu2 %vm910_vm13, %v4527_v42  ;;  %3385 = vmatmul.msk.f32.gmra.mxu3 %vm910_vm13, %v4527_v42 }
 0x11d   : > { %3393 = vmatmul.msk.f32.gmra.mxu0 %vm910_vm13, %v4527_v42  ;;  %3401 = vmatmul.msk.f32.gmra.mxu1 %vm910_vm13, %v4527_v42 }
 0x11e   : > { %3886 = vset.pattern.permute.xlu2 %v3966_v21 }
 0x11f   : > { %1994 = vperm.xlu2 %3886, %v1478_v43   ;;  %2148 = vperm.xlu0 %3885, %v1484_v49  }
 0x120   : > { %1982 = vperm.xlu1 %3887, %v1475_v44   ;;  %v1301_v16 = vpop.permute.xlu1 %1300 }
 0x124   : > { %3378 = vmatmul.msk.f32.gmra.mxu2 %vm910_vm13, %v836_v45  ;;  %3386 = vmatmul.msk.f32.gmra.mxu3 %vm910_vm13, %v836_v45 }
 0x125   : > { %3394 = vmatmul.msk.f32.gmra.mxu0 %vm910_vm13, %v836_v45  ;;  %3402 = vmatmul.msk.f32.gmra.mxu1 %vm910_vm13, %v836_v45 }
 0x127   : > { %3888 = vset.pattern.permute.xlu2 %v3967_v22  ;;  %3894 = vset.pattern.permute.xlu0 %v3967_v22 }
 0x128   : > { %2064 = vperm.xlu2 %3888, %v1478_v43   ;;  %1978 = vperm.xlu1 %3887, %v1474_v46  }
 0x129   : > { %2048 = vperm.xlu0 %3894, %v1474_v46  }
 0x12c   : > { %3379 = vmatmul.msk.f32.gmra.mxu2 %vm910_vm13, %v837_v47  ;;  %3387 = vmatmul.msk.f32.gmra.mxu3 %vm910_vm13, %v837_v47 }
 0x12d   : > { %3395 = vmatmul.msk.f32.gmra.mxu0 %vm910_vm13, %v837_v47  ;;  %3403 = vmatmul.msk.f32.gmra.mxu1 %vm910_vm13, %v837_v47 }
 0x130   : > { %2060 = vperm.xlu2 %3888, %v1477_v36   ;;  %3889 = vset.pattern.permute.xlu1 %v3965_v2 }
 0x131   : > { %1915 = vperm.xlu1 %3889, %v1473_v62   ;;  %2036 = vperm.xlu0 %3894, %v1471_v19  }
 0x134   : > { %3404 = vmatmul.msk.f32.vlgmr.msrb.gmra.mxu2 %vm910_vm13, %v4343_v20  ;;  %3412 = vmatmul.msk.f32.vlgmr.msrb.gmra.mxu3 %vm910_vm13, %v4343_v20 }
 0x135   : > { %3420 = vmatmul.msk.f32.vlgmr.msra.gmra.mxu0 %vm910_vm13, %v4343_v20  ;;  %3428 = vmatmul.msk.f32.vlgmr.msra.gmra.mxu1 %vm910_vm13, %v4343_v20 }
 0x138   : > { %2056 = vperm.xlu2 %3888, %v1476_v40  }
 0x139   : > { %2153 = vperm.xlu1 %3889, %v1485_v5   ;;  %3900 = vset.pattern.permute.xlu0 %v3965_v2 }
 0x13c   : > { %3405 = vmatmul.msk.f32.gmra.mxu2 %vm910_vm13, %v4398_v26  ;;  %3413 = vmatmul.msk.f32.gmra.mxu3 %vm910_vm13, %v4398_v26 }
 0x13d   : > { %3421 = vmatmul.msk.f32.gmra.mxu0 %vm910_vm13, %v4398_v26  ;;  %3429 = vmatmul.msk.f32.gmra.mxu1 %vm910_vm13, %v4398_v26  ;;  %v1286_v26 = vpop.permute.xlu1 %1285 }
 0x140   : > { %2052 = vperm.xlu2 %3888, %v1475_v44  }
 0x141   : > { %3892 = vset.pattern.permute.xlu1 %v3966_v21 }
 0x142   : > { %1970 = vperm.xlu1 %3892, %v1472_v12  }
 0x144   : > { %3406 = vmatmul.msk.f32.gmra.mxu2 %vm910_vm13, %v4451_v30  ;;  %3414 = vmatmul.msk.f32.gmra.mxu3 %vm910_vm13, %v4451_v30 }
 0x145   : > { %3422 = vmatmul.msk.f32.gmra.mxu0 %vm910_vm13, %v4451_v30  ;;  %3430 = vmatmul.msk.f32.gmra.mxu1 %vm910_vm13, %v4451_v30  ;;  %v1276_v39 = vpop.permute.xlu1 %1275 }
 0x148   : > { %3890 = vset.pattern.permute.xlu2 %v3966_v21 }
 0x149   : > { %1974 = vperm.xlu2 %3890, %v1473_v62  }
 0x14a   : > { %3895 = vset.pattern.permute.xlu1 %v3965_v2 }
 0x14b   : > { %1905 = vperm.xlu1 %3895, %v1471_v19  }
 0x14c   : > { %3407 = vmatmul.msk.f32.gmra.mxu2 %vm910_vm13, %v4483_v34  ;;  %3415 = vmatmul.msk.f32.gmra.mxu3 %vm910_vm13, %v4483_v34 }
 0x14d   : > { %3423 = vmatmul.msk.f32.gmra.mxu0 %vm910_vm13, %v4483_v34  ;;  %3431 = vmatmul.msk.f32.gmra.mxu1 %vm910_vm13, %v4483_v34 }
 0x151   : > { %3891 = vset.pattern.permute.xlu2 %v3965_v2 }
 0x152   : > { %1910 = vperm.xlu2 %3891, %v1472_v12  }
 0x153   : > { %3897 = vset.pattern.permute.xlu1 %v3967_v22 }
 0x154   : > { %3408 = vmatmul.msk.f32.gmra.mxu2 %vm910_vm13, %v4505_v38  ;;  %3416 = vmatmul.msk.f32.gmra.mxu3 %vm910_vm13, %v4505_v38 }
 0x155   : > { %3424 = vmatmul.msk.f32.gmra.mxu0 %vm910_vm13, %v4505_v38  ;;  %3432 = vmatmul.msk.f32.gmra.mxu1 %vm910_vm13, %v4505_v38 }
 0x156   : > { %2040 = vperm.xlu1 %3897, %v1472_v12  }
 0x15a   : > { %3893 = vset.pattern.permute.xlu2 %v3967_v22 }
 0x15b   : > { %2044 = vperm.xlu2 %3893, %v1473_v62   ;;  %v1483_v62 = vld [vmem:[%s6200_s7 + $0x20] sm:$0xff] }
 0x15c   : > { %3409 = vmatmul.msk.f32.gmra.mxu2 %vm910_vm13, %v4527_v42  ;;  %3417 = vmatmul.msk.f32.gmra.mxu3 %vm910_vm13, %v4527_v42 }
 0x15d   : > { %3425 = vmatmul.msk.f32.gmra.mxu0 %vm910_vm13, %v4527_v42  ;;  %3433 = vmatmul.msk.f32.gmra.mxu1 %vm910_vm13, %v4527_v42 }
 0x15e   : > { %3899 = vset.pattern.permute.xlu1 %v3965_v2 }
 0x160   : > { %v1296_v15 = vpop.permute.xlu2 %1295 }
 0x163   : > { %3896 = vset.pattern.permute.xlu2 %v3966_v21 }
 0x164   : > { %3410 = vmatmul.msk.f32.gmra.mxu2 %vm910_vm13, %v836_v45  ;;  %3418 = vmatmul.msk.f32.gmra.mxu3 %vm910_vm13, %v836_v45 }
 0x165   : > { %3426 = vmatmul.msk.f32.gmra.mxu0 %vm910_vm13, %v836_v45  ;;  %3434 = vmatmul.msk.f32.gmra.mxu1 %vm910_vm13, %v836_v45 }
 0x166   : > { %1966 = vperm.xlu2 %3896, %v1471_v19  }
 0x168   : > { %v1281_v27 = vpop.permute.xlu2 %1280 }
 0x16c   : > { %3411 = vmatmul.msk.f32.gmra.mxu2 %vm910_vm13, %v837_v47  ;;  %3419 = vmatmul.msk.f32.gmra.mxu3 %vm910_vm13, %v837_v47 }
 0x16d   : > { %3427 = vmatmul.msk.f32.gmra.mxu0 %vm910_vm13, %v837_v47  ;;  %3435 = vmatmul.msk.f32.gmra.mxu1 %vm910_vm13, %v837_v47  ;;  %v1266_v47 = vpop.permute.xlu0 %1265 }
 0x16e   : > { %v4628_v50 = vpop.f32.mrf.mxu0  ;;  %v4630_v51 = vpop.f32.mrf.mxu1  ;;  %3898 = vset.pattern.permute.xlu2 %v3965_v2  ;;  %v1480_v2 = vld [vmem:[%s6200_s7 + $0x8] sm:$0xff] }
 0x16f   : > { %2143 = vperm.xlu2 %3898, %v1483_v62  }
 0x170   : > { %v1271_v40 = vpop.permute.xlu2 %1270 }
 0x173   : > { %v4632_v52 = vpop.f32.mrf.mxu2  ;;  %v4634_v53 = vpop.f32.mrf.mxu3 }
 0x178   : > { %v4636_v54 = vpop.f32.mrf.mxu0  ;;  %v4638_v55 = vpop.f32.mrf.mxu1 }
 0x17d   : > { %v4640_v56 = vpop.f32.mrf.mxu2  ;;  %v4642_v57 = vpop.f32.mrf.mxu3 }
 0x17e   : > { %v4770_v48 = vadd.f32 %v1271_v40, %v4640_v56  ;;  %v4773_v49 = vadd.f32 %v1271_v40, %v4642_v57  ;;  %v4794_v56 = vadd.f32 %v1266_v47, %v4632_v52  ;;  %v4797_v57 = vadd.f32 %v1266_v47, %v4634_v53  ;;  %v4987_v40 = vld [vmem:[%s6198_s5 + $0x30] sm:$0xff] }
 0x180   : > { %vm1321_vm1 = vcmp.gt.f32.partialorder %v4770_v48, 0.0  ;;  %vm1322_vm2 = vcmp.gt.f32.partialorder %v4773_v49, 0.0  ;;  %vm1319_vm3 = vcmp.gt.f32.partialorder %v4794_v56, 0.0 }
 0x182   : > { %v4644_v58 = vpop.f32.mrf.mxu0  ;;  %v4646_v59 = vpop.f32.mrf.mxu1 }
 0x187   : > { %v4648_v60 = vpop.f32.mrf.mxu2  ;;  %v4650_v61 = vpop.f32.mrf.mxu3 }
 0x188   : > { %v4750_v45 = vadd.f32 %v1276_v39, %v4648_v60  ;;  %v4753_v46 = vadd.f32 %v1276_v39, %v4650_v61 }
 0x18a   : > { %v4655_v63 = vpop.f32.mrf.mxu0  ;;  %v4657_v0 = vpop.f32.mrf.mxu1  ;;  %vm1323_vm14 = vcmp.gt.f32.partialorder %v4750_v45, 0.0  ;;  %vm6208_vm15 = vcmp.gt.f32.partialorder %v4753_v46, 0.0 }
 0x18f   : > { %v4659_v1 = vpop.f32.mrf.mxu2  ;;  %v4661_v3 = vpop.f32.mrf.mxu3 }
 0x190   : > { %v4728_v41 = vadd.f32 %v1281_v27, %v4659_v1  ;;  %v4731_v42 = vadd.f32 %v1281_v27, %v4661_v3  ;;  %v1481_v3 = vld [vmem:[%s6200_s7 + $0x10] sm:$0xff] }
 0x191   : > { %2133 = vperm.xlu2 %3898, %v1481_v3  }
 0x192   : > { %v4666_v6 = vpop.f32.mrf.mxu0  ;;  %v4668_v7 = vpop.f32.mrf.mxu1  ;;  %vm1325_vm11 = vcmp.gt.f32.partialorder %v4728_v41, 0.0  ;;  %vm1326_vm12 = vcmp.gt.f32.partialorder %v4731_v42, 0.0 }
 0x197   : > { %v964_v8 = vpop.f32.mrf.mxu2  ;;  %v1005_v9 = vpop.f32.mrf.mxu3 }
 0x198   : > { %v4711_v37 = vadd.f32 %v1286_v26, %v964_v8  ;;  %v4713_v38 = vadd.f32 %v1286_v26, %v1005_v9  ;;  %v4955_v26 = vld [vmem:[%s6198_s5 + $0x28] sm:$0xff] }
 0x19a   : > { %v4671_v10 = vpop.f32.mrf.mxu0  ;;  %v4673_v11 = vpop.f32.mrf.mxu1  ;;  %vm1327_vm9 = vcmp.gt.f32.partialorder %v4711_v37, 0.0  ;;  %vm1328_vm10 = vcmp.gt.f32.partialorder %v4713_v38, 0.0 }
 0x19f   : > { %v967_v13 = vpop.f32.mrf.mxu2  ;;  %v1008_v14 = vpop.f32.mrf.mxu3 }
 0x1a0   : > { %v4695_v35 = vadd.f32 %v1291_v28, %v967_v13  ;;  %v4697_v21 = vadd.f32 %v1291_v28, %v1008_v14  ;;  %v4926_v13 = vld [vmem:[%s6198_s5 + $0x18] sm:$0xff] }
 0x1a2   : > { %v1052_v17 = vpop.f32.mrf.mxu0  ;;  %v1093_v18 = vpop.f32.mrf.mxu1  ;;  %vm1329_vm7 = vcmp.gt.f32.partialorder %v4695_v35, 0.0  ;;  %vm1330_vm8 = vcmp.gt.f32.partialorder %v4697_v21, 0.0 }
 0x1a7   : > { %v970_v20 = vpop.f32.mrf.mxu2  ;;  %v1011_v23 = vpop.f32.mrf.mxu3 }
 0x1a8   : > { %v4687_v31 = vadd.f32 %v1296_v15, %v970_v20  ;;  %v4689_v32 = vadd.f32 %v1296_v15, %v1011_v23  ;;  %v2383_v23 = vld [vmem:[%s6202_s9 + $0x30] sm:$0xff] }
 0x1aa   : > { %v1055_v24 = vpop.f32.mrf.mxu0  ;;  %v1096_v25 = vpop.f32.mrf.mxu1  ;;  %vm1331_vm5 = vcmp.gt.f32.partialorder %v4687_v31, 0.0  ;;  %vm1332_vm6 = vcmp.gt.f32.partialorder %v4689_v32, 0.0 }
 0x1af   : > { %v973_v29 = vpop.f32.mrf.mxu2  ;;  %v1014_v30 = vpop.f32.mrf.mxu3 }
 0x1b0   : > { %v4691_v33 = vadd.f32 %v1301_v16, %v973_v29  ;;  %v4693_v34 = vadd.f32 %v1301_v16, %v1014_v30  ;;  %v2381_v29 = vld [vmem:[%s6202_s9 + $0x20] sm:$0xff] }
 0x1b2   : > { %vm1333_vm0 = vcmp.gt.f32.partialorder %v4691_v33, 0.0  ;;  %vm1334_vm4 = vcmp.gt.f32.partialorder %v4693_v34, 0.0  ;;  %v4701_v22 = vpop.f32.mrf.mxu0  ;;  %v4703_v36 = vpop.f32.mrf.mxu1 }
 0x1b3   : > { %3640 = vmatpush.msk.msra.mxu2 %vm1333_vm0, %v4691_v33  ;;  %3648 = vmatpush.msk.msra.mxu3 %vm1334_vm4, %v4693_v34  ;;  %v2382_v33 = vld [vmem:[%s6202_s9 + $0x28] sm:$0xff]  ;;  %v2380_v34 = vld [vmem:[%s6202_s9 + $0x18] sm:$0xff] }
 0x1b4   : > { %3656 = vmatpush.msk.msrb.mxu0 %vm1333_vm0, %v1055_v24  ;;  %3664 = vmatpush.msk.msrb.mxu1 %vm1334_vm4, %v1096_v25 }
 0x1b5   : > { %3641 = vmatpush.msk.msra.mxu2 %vm1331_vm5, %v4687_v31  ;;  %3649 = vmatpush.msk.msra.mxu3 %vm1332_vm6, %v4689_v32  ;;  %v5034_v31 = vld [vmem:[%s6198_s5 + $0x38] sm:$0xff]  ;;  %v2378_v32 = vld [vmem:[%s6202_s9 + $0x8] sm:$0xff] }
 0x1b6   : > { %3657 = vmatpush.msk.msrb.mxu0 %vm1331_vm5, %v1052_v17  ;;  %3665 = vmatpush.msk.msrb.mxu1 %vm1332_vm6, %v1093_v18  ;;  %v4939_v18 = vld [vmem:[%s6198_s5 + $0x20] sm:$0xff] }
 0x1b7   : > { %v4739_v43 = vpop.f32.mrf.mxu2  ;;  %v4741_v44 = vpop.f32.mrf.mxu3  ;;  %3642 = vmatpush.msk.msra.mxu2 %vm1329_vm7, %v4695_v35  ;;  %3650 = vmatpush.msk.msra.mxu3 %vm1330_vm8, %v4697_v21  ;;  %v2377_v35 = vld [vmem:[%s6202_s9] sm:$0xff] }
 0x1b8   : > { %3658 = vmatpush.msk.msrb.mxu0 %vm1329_vm7, %v4671_v10  ;;  %3666 = vmatpush.msk.msrb.mxu1 %vm1330_vm8, %v4673_v11  ;;  %v1479_v10 = vld [vmem:[%s6200_s7] sm:$0xff]  ;;  %v5110_v21 = vpop.permute.xlu1 %1940 }
 0x1b9   : > { %3643 = vmatpush.msk.msra.mxu2 %vm1327_vm9, %v4711_v37  ;;  %3651 = vmatpush.msk.msra.mxu3 %vm1328_vm10, %v4713_v38  ;;  %v5138_v38 = vpop.permute.xlu0 %1935 }
 0x1ba   : > { %v4775_v60 = vpop.f32.mrf.mxu0  ;;  %v4777_v61 = vpop.f32.mrf.mxu1  ;;  %3659 = vmatpush.msk.msrb.mxu0 %vm1327_vm9, %v4666_v6  ;;  %3667 = vmatpush.msk.msrb.mxu1 %vm1328_vm10, %v4668_v7  ;;  %v4910_v7 = vld [vmem:[%s6198_s5 + $0x10] sm:$0xff]  ;;  %6268 = vst [vmem:[#allocation11_spill] sm:$0xff] %v5138_v38 }
 0x1bb   : > { %3644 = vmatpush.msk.msra.mxu2 %vm1325_vm11, %v4728_v41  ;;  %3652 = vmatpush.msk.msra.mxu3 %vm1326_vm12, %v4731_v42 }
 0x1bc   : > { %3660 = vmatpush.msk.msrb.mxu0 %vm1325_vm11, %v4655_v63  ;;  %3668 = vmatpush.msk.msrb.mxu1 %vm1326_vm12, %v4657_v0  ;;  %v4883_v63 = vld [vmem:[%s6198_s5 + $0x8] sm:$0xff] }
 0x1bd   : > { %3645 = vmatpush.msk.msra.mxu2 %vm1323_vm14, %v4750_v45  ;;  %3653 = vmatpush.msk.msra.mxu3 %vm6208_vm15, %v4753_v46 }
 0x1be   : > { %3661 = vmatpush.msk.msrb.mxu0 %vm1323_vm14, %v4644_v58  ;;  %3669 = vmatpush.msk.msrb.mxu1 %vm6208_vm15, %v4646_v59  ;;  %vm1320_vm15 = vcmp.gt.f32.partialorder %v4797_v57, 0.0  ;;  %v4842_v58 = vld [vmem:[%s6198_s5] sm:$0xff]  ;;  %v1482_v59 = vld [vmem:[%s6200_s7 + $0x18] sm:$0xff] }
 0x1bf   : > { %v4821_v52 = vpop.f32.mrf.mxu2  ;;  %v4823_v53 = vpop.f32.mrf.mxu3  ;;  %3646 = vmatpush.msk.msra.mxu2 %vm1321_vm1, %v4770_v48  ;;  %3654 = vmatpush.msk.msra.mxu3 %vm1322_vm2, %v4773_v49 }
 0x1c0   : > { %3662 = vmatpush.msk.msrb.mxu0 %vm1321_vm1, %v4636_v54  ;;  %3670 = vmatpush.msk.msrb.mxu1 %vm1322_vm2, %v4638_v55 }
 0x1c1   : > { %3647 = vmatpush.msk.msra.mxu2 %vm1319_vm3, %v4794_v56  ;;  %3655 = vmatpush.msk.msra.mxu3 %vm1320_vm15, %v4797_v57 }
 0x1c2   : > { %v4850_v54 = vpop.f32.mrf.mxu0  ;;  %v4852_v55 = vpop.f32.mrf.mxu1  ;;  %3663 = vmatpush.msk.msrb.mxu0 %vm1319_vm3, %v4628_v50  ;;  %3671 = vmatpush.msk.msrb.mxu1 %vm1320_vm15, %v4630_v51 }
 0x1c3   : > { %3436 = vmatmul.msk.f32.vlgmr.msra.gmra.mxu2 %vm910_vm13, %v4842_v58  ;;  %3444 = vmatmul.msk.f32.vlgmr.msra.gmra.mxu3 %vm910_vm13, %v4842_v58 }
 0x1c4   : > { %3452 = vmatmul.msk.f32.vlgmr.msrb.gmra.mxu0 %vm910_vm13, %v4842_v58  ;;  %3460 = vmatmul.msk.f32.vlgmr.msrb.gmra.mxu1 %vm910_vm13, %v4842_v58 }
 0x1c5   : > { %2138 = vperm.xlu1 %3899, %v1482_v59   ;;  %2123 = vperm.xlu2 %3898, %v1479_v10   ;;  %v1997_v10 = vperm.slane %v4097_v4, 1 }
 0x1c7   : > { %v4876_v50 = vpop.f32.mrf.mxu2  ;;  %v4878_v51 = vpop.f32.mrf.mxu3 }
 0x1ca   : > { %v4885_v0 = vpop.f32.mrf.mxu0  ;;  %v4887_v1 = vpop.f32.mrf.mxu1 }
 0x1cb   : > { %3437 = vmatmul.msk.f32.gmra.mxu2 %vm910_vm13, %v4883_v63  ;;  %3445 = vmatmul.msk.f32.gmra.mxu3 %vm910_vm13, %v4883_v63 }
 0x1cc   : > { %3453 = vmatmul.msk.f32.gmra.mxu0 %vm910_vm13, %v4883_v63  ;;  %3461 = vmatmul.msk.f32.gmra.mxu1 %vm910_vm13, %v4883_v63 }
 0x1cd   : > { %2128 = vperm.xlu1 %3899, %v1480_v2   ;;  %2828 = vperm.xlu2 %3898, %v2382_v33  }
 0x1cf   : > { %v4903_v5 = vpop.f32.mrf.mxu2  ;;  %v4905_v6 = vpop.f32.mrf.mxu3 }
 0x1d2   : > { %v1210_v8 = vpop.f32.mrf.mxu0  ;;  %v1251_v9 = vpop.f32.mrf.mxu1 }
 0x1d3   : > { %3438 = vmatmul.msk.f32.gmra.mxu2 %vm910_vm13, %v4910_v7  ;;  %3446 = vmatmul.msk.f32.gmra.mxu3 %vm910_vm13, %v4910_v7 }
 0x1d4   : > { %3454 = vmatmul.msk.f32.gmra.mxu0 %vm910_vm13, %v4910_v7  ;;  %3462 = vmatmul.msk.f32.gmra.mxu1 %vm910_vm13, %v4910_v7 }
 0x1d5   : > { %2833 = vperm.xlu1 %3899, %v2383_v23   ;;  %2818 = vperm.xlu2 %3898, %v2380_v34   ;;  %v2067_v23 = vperm.slane %v4097_v4, 2 }
 0x1d7   : > { %v1128_v11 = vpop.f32.mrf.mxu2  ;;  %v1169_v12 = vpop.f32.mrf.mxu3 }
 0x1da   : > { %v1213_v14 = vpop.f32.mrf.mxu0  ;;  %v1254_v15 = vpop.f32.mrf.mxu1 }
 0x1db   : > { %3439 = vmatmul.msk.f32.gmra.mxu2 %vm910_vm13, %v4926_v13  ;;  %3447 = vmatmul.msk.f32.gmra.mxu3 %vm910_vm13, %v4926_v13 }
 0x1dc   : > { %3455 = vmatmul.msk.f32.gmra.mxu0 %vm910_vm13, %v4926_v13  ;;  %3463 = vmatmul.msk.f32.gmra.mxu1 %vm910_vm13, %v4926_v13 }
 0x1dd   : > { %2823 = vperm.xlu1 %3899, %v2381_v29   ;;  %2803 = vperm.xlu2 %3898, %v2377_v35  }
 0x1df   : > { %v1131_v16 = vpop.f32.mrf.mxu2  ;;  %v1172_v17 = vpop.f32.mrf.mxu3 }
 0x1e2   : > { %v1216_v19 = vpop.f32.mrf.mxu0  ;;  %v1257_v20 = vpop.f32.mrf.mxu1 }
 0x1e3   : > { %3440 = vmatmul.msk.f32.gmra.mxu2 %vm910_vm13, %v4939_v18  ;;  %3448 = vmatmul.msk.f32.gmra.mxu3 %vm910_vm13, %v4939_v18 }
 0x1e4   : > { %3456 = vmatmul.msk.f32.gmra.mxu0 %vm910_vm13, %v4939_v18  ;;  %3464 = vmatmul.msk.f32.gmra.mxu1 %vm910_vm13, %v4939_v18 }
 0x1e5   : > { %2808 = vperm.xlu1 %3899, %v2378_v32  }
 0x1e7   : > { %v1134_v24 = vpop.f32.mrf.mxu2  ;;  %v1175_v25 = vpop.f32.mrf.mxu3 }
 0x1ea   : > { %v1219_v27 = vpop.f32.mrf.mxu0  ;;  %v1260_v28 = vpop.f32.mrf.mxu1 }
 0x1eb   : > { %3441 = vmatmul.msk.f32.gmra.mxu2 %vm910_vm13, %v4955_v26  ;;  %3449 = vmatmul.msk.f32.gmra.mxu3 %vm910_vm13, %v4955_v26 }
 0x1ec   : > { %3457 = vmatmul.msk.f32.gmra.mxu0 %vm910_vm13, %v4955_v26  ;;  %3465 = vmatmul.msk.f32.gmra.mxu1 %vm910_vm13, %v4955_v26 }
 0x1ed   : > { %3688 = vmatpush.msk.msra.mxu0 %vm1333_vm0, %v1219_v27  ;;  %3696 = vmatpush.msk.msra.mxu1 %vm1334_vm4, %v1260_v28 }
 0x1ef   : > { %3689 = vmatpush.msk.msra.mxu0 %vm1331_vm5, %v1216_v19  ;;  %3697 = vmatpush.msk.msra.mxu1 %vm1332_vm6, %v1257_v20  ;;  %v1137_v30 = vpop.f32.mrf.mxu2  ;;  %v1178_v39 = vpop.f32.mrf.mxu3 }
 0x1f0   : > { %3672 = vmatpush.msk.msrb.mxu2 %vm1333_vm0, %v1137_v30  ;;  %3680 = vmatpush.msk.msrb.mxu3 %vm1334_vm4, %v1178_v39  ;;  %vm6263_vm0 = vcmp.gt.f32.partialorder %v4753_v46, 0.0 }
 0x1f1   : > { %3690 = vmatpush.msk.msra.mxu0 %vm1329_vm7, %v1213_v14  ;;  %3698 = vmatpush.msk.msra.mxu1 %vm1330_vm8, %v1254_v15  ;;  %vm6264_vm4 = vmmov %vm6263_vm0  ;;  %v1943_v14 = vperm.slane %v4097_v4, 0  ;;  %v1944_v15 = vperm.slane %v4097_v4, 4 }
 0x1f2   : > { %3673 = vmatpush.msk.msrb.mxu2 %vm1331_vm5, %v1134_v24  ;;  %3681 = vmatpush.msk.msrb.mxu3 %vm1332_vm6, %v1175_v25  ;;  %v2068_v24 = vperm.slane %v4097_v4, 6 }
 0x1f3   : > { %3691 = vmatpush.msk.msra.mxu0 %vm1327_vm9, %v1210_v8  ;;  %3699 = vmatpush.msk.msra.mxu1 %vm1328_vm10, %v1251_v9  ;;  %v1947_v19 = vperm.slane %v1943_v14, 0  ;;  %v5238_v20 = vperm.slane %v1944_v15, 0 }
 0x1f4   : > { %3442 = vmatmul.msk.f32.gmra.mxu2 %vm910_vm13, %v4987_v40  ;;  %3450 = vmatmul.msk.f32.gmra.mxu3 %vm910_vm13, %v4987_v40 }
 0x1f5   : > { %3458 = vmatmul.msk.f32.gmra.mxu0 %vm910_vm13, %v4987_v40  ;;  %3466 = vmatmul.msk.f32.gmra.mxu1 %vm910_vm13, %v4987_v40  ;;  %v1963_v39 = vmul.f32 %v1947_v19, %v5110_v21  ;;  %v1961_v34 = vmul.f32 %v1947_v19, %v5138_v38  ;;  %v1962_v35 = vmul.f32 %v5238_v20, %v5138_v38 }
 0x1f6   : > { %3692 = vmatpush.msk.msra.mxu0 %vm1325_vm11, %v4885_v0  ;;  %3700 = vmatpush.msk.msra.mxu1 %vm1326_vm12, %v4887_v1 }
 0x1f7   : > { %3674 = vmatpush.msk.msrb.mxu2 %vm1329_vm7, %v1131_v16  ;;  %3682 = vmatpush.msk.msrb.mxu3 %vm1330_vm8, %v1172_v17  ;;  %v5234_v17 = vperm.slane %v1997_v10, 1 }
 0x1f8   : > { %3693 = vmatpush.msk.msra.mxu0 %vm1323_vm14, %v4850_v54  ;;  %3701 = vmatpush.msk.msra.mxu1 %vm6263_vm0, %v4852_v55 }
 0x1f9   : > { %3675 = vmatpush.msk.msrb.mxu2 %vm1327_vm9, %v1128_v11  ;;  %3683 = vmatpush.msk.msrb.mxu3 %vm1328_vm10, %v1169_v12  ;;  %v1998_v11 = vperm.slane %v4097_v4, 5  ;;  %v5257_v4 = vperm.slane %v2067_v23, 2 }
 0x1fa   : > { %3694 = vmatpush.msk.msra.mxu0 %vm1321_vm1, %v4775_v60  ;;  %3702 = vmatpush.msk.msra.mxu1 %vm1322_vm2, %v4777_v61 }
 0x1fb   : > { %3676 = vmatpush.msk.msrb.mxu2 %vm1325_vm11, %v4903_v5  ;;  %3684 = vmatpush.msk.msrb.mxu3 %vm1326_vm12, %v4905_v6 }
 0x1fc   : > { %3695 = vmatpush.msk.msra.mxu0 %vm1319_vm3, %v4701_v22  ;;  %3703 = vmatpush.msk.msra.mxu1 %vm1320_vm15, %v4703_v36  ;;  %v5112_v22 = vpop.permute.xlu2 %1994  ;;  %v5122_v36 = vpop.permute.xlu1 %1990 }
 0x1fd   : > { %3443 = vmatmul.msk.f32.gmra.mxu2 %vm910_vm13, %v5034_v31  ;;  %3451 = vmatmul.msk.f32.gmra.mxu3 %vm910_vm13, %v5034_v31  ;;  %6265 = vst [vmem:[#allocation8_spill] sm:$0xff] %v5112_v22  ;;  %v2017_v27 = vmul.f32 %v5234_v17, %v5112_v22  ;;  %v2015_v10 = vmul.f32 %v5234_v17, %v5122_v36 }
 0x1fe   : > { %3459 = vmatmul.msk.f32.gmra.mxu0 %vm910_vm13, %v5034_v31  ;;  %3467 = vmatmul.msk.f32.gmra.mxu1 %vm910_vm13, %v5034_v31  ;;  %6266 = vst [vmem:[#allocation9_spill] sm:$0xff] %v5122_v36 }
 0x1ff   : > { %3677 = vmatpush.msk.msrb.mxu2 %vm1323_vm14, %v4876_v50  ;;  %3685 = vmatpush.msk.msrb.mxu3 %vm6264_vm4, %v4878_v51 }
 0x201   : > { %3678 = vmatpush.msk.msrb.mxu2 %vm1321_vm1, %v4821_v52  ;;  %3686 = vmatpush.msk.msrb.mxu3 %vm1322_vm2, %v4823_v53 }
 0x203   : > { %3679 = vmatpush.msk.msrb.mxu2 %vm1319_vm3, %v4739_v43  ;;  %3687 = vmatpush.msk.msrb.mxu3 %vm1320_vm15, %v4741_v44  ;;  %v5156_v43 = vpop.permute.xlu0 %1930 }
 0x204   : > { %v5124_v37 = vpop.permute.xlu2 %2064  ;;  %v5144_v41 = vpop.permute.xlu1 %1986  ;;  %6271 = vst [vmem:[#allocation14_spill] sm:$0xff] %v5156_v43  ;;  %v1959_v14 = vmul.f32 %v1947_v19, %v5156_v43 }
 0x205   : > { %3468 = vmatmul.msk.f32.vlgmr.msrb.gmra.mxu2 %vm910_vm13, %v4842_v58  ;;  %3476 = vmatmul.msk.f32.vlgmr.msrb.gmra.mxu3 %vm910_vm13, %v4842_v58  ;;  %6267 = vst [vmem:[#allocation10_spill] sm:$0xff] %v5124_v37  ;;  %v2013_v15 = vmul.f32 %v5234_v17, %v5144_v41 }
 0x206   : > { %3484 = vmatmul.msk.f32.vlgmr.msra.gmra.mxu0 %vm910_vm13, %v4842_v58  ;;  %3492 = vmatmul.msk.f32.vlgmr.msra.gmra.mxu1 %vm910_vm13, %v4842_v58  ;;  %6269 = vst [vmem:[#allocation12_spill] sm:$0xff] %v5144_v41 }
 0x20b   : > { %v5174_v48 = vpop.permute.xlu0 %1925 }
 0x20c   : > { %v5146_v42 = vpop.permute.xlu2 %2060  ;;  %v5158_v44 = vpop.permute.xlu1 %1982  ;;  %6276 = vst [vmem:[#allocation19_spill] sm:$0xff] %v5174_v48 }
 0x20d   : > { %3469 = vmatmul.msk.f32.gmra.mxu2 %vm910_vm13, %v4883_v63  ;;  %3477 = vmatmul.msk.f32.gmra.mxu3 %vm910_vm13, %v4883_v63  ;;  %6270 = vst [vmem:[#allocation13_spill] sm:$0xff] %v5146_v42 }
 0x20e   : > { %3485 = vmatmul.msk.f32.gmra.mxu0 %vm910_vm13, %v4883_v63  ;;  %3493 = vmatmul.msk.f32.gmra.mxu1 %vm910_vm13, %v4883_v63  ;;  %6272 = vst [vmem:[#allocation15_spill] sm:$0xff] %v5158_v44 }
 0x213   : > { %v5192_v54 = vpop.permute.xlu0 %1920 }
 0x214   : > { %v5160_v45 = vpop.permute.xlu2 %2056  ;;  %v5176_v49 = vpop.permute.xlu1 %1978  ;;  %6284 = vst [vmem:[#allocation27_spill] sm:$0xff] %v5192_v54 }
 0x215   : > { %3470 = vmatmul.msk.f32.gmra.mxu2 %vm910_vm13, %v4910_v7  ;;  %3478 = vmatmul.msk.f32.gmra.mxu3 %vm910_vm13, %v4910_v7  ;;  %6273 = vst [vmem:[#allocation16_spill] sm:$0xff] %v5160_v45 }
 0x216   : > { %3486 = vmatmul.msk.f32.gmra.mxu0 %vm910_vm13, %v4910_v7  ;;  %3494 = vmatmul.msk.f32.gmra.mxu1 %vm910_vm13, %v4910_v7  ;;  %6277 = vst [vmem:[#allocation20_spill] sm:$0xff] %v5176_v49 }
 0x21b   : > { %v5210_v2 = vpop.permute.xlu0 %2158 }
 0x21c   : > { %v5178_v60 = vpop.permute.xlu2 %2052  ;;  %v5190_v58 = vpop.permute.xlu1 %1915 }
 0x21d   : > { %3471 = vmatmul.msk.f32.gmra.mxu2 %vm910_vm13, %v4926_v13  ;;  %3479 = vmatmul.msk.f32.gmra.mxu3 %vm910_vm13, %v4926_v13  ;;  %6278 = vst [vmem:[#allocation21_spill] sm:$0xff] %v5178_v60 }
 0x21e   : > { %3487 = vmatmul.msk.f32.gmra.mxu0 %vm910_vm13, %v4926_v13  ;;  %3495 = vmatmul.msk.f32.gmra.mxu1 %vm910_vm13, %v4926_v13  ;;  %6283 = vst [vmem:[#allocation26_spill] sm:$0xff] %v5190_v58 }
 0x223   : > { %v5232_v16 = vpop.permute.xlu0 %2148 }
 0x224   : > { %v5188_v53 = vpop.permute.xlu2 %1974  ;;  %v5204_v63 = vpop.permute.xlu1 %2153 }
 0x225   : > { %3472 = vmatmul.msk.f32.gmra.mxu2 %vm910_vm13, %v4939_v18  ;;  %3480 = vmatmul.msk.f32.gmra.mxu3 %vm910_vm13, %v4939_v18  ;;  %6282 = vst [vmem:[#allocation25_spill] sm:$0xff] %v5188_v53 }
 0x226   : > { %3488 = vmatmul.msk.f32.gmra.mxu0 %vm910_vm13, %v4939_v18  ;;  %3496 = vmatmul.msk.f32.gmra.mxu1 %vm910_vm13, %v4939_v18  ;;  %v5236_v18 = vperm.slane %v1998_v11, 1 }
 0x228   : > { %v2018_v28 = vmul.f32 %v5236_v18, %v5112_v22  ;;  %v2016_v11 = vmul.f32 %v5236_v18, %v5122_v36  ;;  %v1960_v36 = vmul.f32 %v5238_v20, %v5156_v43  ;;  %v1953_v43 = vmul.f32 %v1947_v19, %v5190_v58 }
 0x22b   : > { %v5275_v23 = vpop.permute.xlu0 %2048 }
 0x22c   : > { %v5202_v51 = vpop.permute.xlu2 %1910  ;;  %v5222_v9 = vpop.permute.xlu1 %1970  ;;  %6298 = vst [vmem:[#allocation41_spill] sm:$0xff] %v5275_v23 }
 0x22d   : > { %3473 = vmatmul.msk.f32.gmra.mxu2 %vm910_vm13, %v4955_v26  ;;  %3481 = vmatmul.msk.f32.gmra.mxu3 %vm910_vm13, %v4955_v26  ;;  %6288 = vst [vmem:[#allocation31_spill] sm:$0xff] %v5202_v51 }
 0x22e   : > { %3489 = vmatmul.msk.f32.gmra.mxu0 %vm910_vm13, %v4955_v26  ;;  %3497 = vmatmul.msk.f32.gmra.mxu1 %vm910_vm13, %v4955_v26  ;;  %6291 = vst [vmem:[#allocation34_spill] sm:$0xff] %v5222_v9 }
 0x234   : > { %v5220_v8 = vpop.permute.xlu2 %2044  ;;  %v5263_v33 = vpop.permute.xlu1 %1905 }
 0x235   : > { %3474 = vmatmul.msk.f32.gmra.mxu2 %vm910_vm13, %v4987_v40  ;;  %3482 = vmatmul.msk.f32.gmra.mxu3 %vm910_vm13, %v4987_v40  ;;  %6297 = vst [vmem:[#allocation40_spill] sm:$0xff] %v5263_v33 }
 0x236   : > { %3490 = vmatmul.msk.f32.gmra.mxu0 %vm910_vm13, %v4987_v40  ;;  %3498 = vmatmul.msk.f32.gmra.mxu1 %vm910_vm13, %v4987_v40  ;;  %v1964_v40 = vmul.f32 %v5238_v20, %v5110_v21 }
 0x23c   : > { %v5261_v32 = vpop.permute.xlu2 %1966 }
 0x23d   : > { %3475 = vmatmul.msk.f32.gmra.mxu2 %vm910_vm13, %v5034_v31  ;;  %3483 = vmatmul.msk.f32.gmra.mxu3 %vm910_vm13, %v5034_v31  ;;  %6296 = vst [vmem:[#allocation39_spill] sm:$0xff] %v5261_v32 }
 0x23e   : > { %3491 = vmatmul.msk.f32.gmra.mxu0 %vm910_vm13, %v5034_v31  ;;  %3499 = vmatmul.msk.f32.gmra.mxu1 %vm910_vm13, %v5034_v31  ;;  %v5259_v31 = vperm.slane %v2068_v24, 2 }
 0x241   : > { %v5170_v46 = vpop.f32.mrf.mxu0  ;;  %v5172_v47 = vpop.f32.mrf.mxu1 }
 0x242   : > { %6274 = vst [vmem:[#allocation17_spill] sm:$0xff] %v5170_v46  ;;  %v2087_v46 = vmul.f32 %v5257_v4, %v5124_v37 }
 0x243   : > { %6275 = vst [vmem:[#allocation18_spill] sm:$0xff] %v5172_v47  ;;  %v2033_v47 = vadd.f32 %v2017_v27, %v1963_v39  ;;  %v1957_v27 = vmul.f32 %v1947_v19, %v5174_v48  ;;  %v2014_v39 = vmul.f32 %v5236_v18, %v5144_v41  ;;  %v1956_v41 = vmul.f32 %v5238_v20, %v5192_v54 }
 0x246   : > { %v5180_v61 = vpop.f32.mrf.mxu2  ;;  %v5182_v56 = vpop.f32.mrf.mxu3 }
 0x247   : > { %6279 = vst [vmem:[#allocation22_spill] sm:$0xff] %v5182_v56  ;;  %v5324_v56 = vpop.permute.xlu1 %2040 }
 0x248   : > { %6302 = vst [vmem:[#allocation45_spill] sm:$0xff] %v5324_v56 }
 0x249   : > { %v5184_v57 = vpop.f32.mrf.mxu0  ;;  %v5186_v52 = vpop.f32.mrf.mxu1 }
 0x24a   : > { %6280 = vst [vmem:[#allocation23_spill] sm:$0xff] %v5184_v57  ;;  %v2088_v57 = vmul.f32 %v5259_v31, %v5124_v37  ;;  %v1958_v37 = vmul.f32 %v5238_v20, %v5174_v48  ;;  %v2081_v48 = vmul.f32 %v5257_v4, %v5178_v60 }
 0x24b   : > { %6281 = vst [vmem:[#allocation24_spill] sm:$0xff] %v5186_v52  ;;  %v2034_v52 = vadd.f32 %v2018_v28, %v1964_v40  ;;  %v2029_v28 = vadd.f32 %v2013_v15, %v1959_v14  ;;  %v2083_v40 = vmul.f32 %v5257_v4, %v5160_v45  ;;  %v2011_v14 = vmul.f32 %v5234_v17, %v5158_v44 }
 0x24c   : > { %v2012_v15 = vmul.f32 %v5236_v18, %v5158_v44 }
 0x24d   : > { %v2099_v44 = vadd.f32 %v2083_v40, %v2029_v28  ;;  %v2027_v28 = vadd.f32 %v2011_v14, %v1957_v27 }
 0x24e   : > { %v5194_v55 = vpop.f32.mrf.mxu2  ;;  %v5196_v59 = vpop.f32.mrf.mxu3 }
 0x24f   : > { %6285 = vst [vmem:[#allocation28_spill] sm:$0xff] %v5196_v59  ;;  %v2004_v59 = vmul.f32 %v5236_v18, %v5261_v32 }
 0x251   : > { %v5198_v62 = vpop.f32.mrf.mxu0  ;;  %v5200_v50 = vpop.f32.mrf.mxu1 }
 0x252   : > { %6286 = vst [vmem:[#allocation29_spill] sm:$0xff] %v5198_v62  ;;  %v2085_v62 = vmul.f32 %v5257_v4, %v5146_v42 }
 0x253   : > { %6287 = vst [vmem:[#allocation30_spill] sm:$0xff] %v5200_v50  ;;  %v2031_v50 = vadd.f32 %v2015_v10, %v1961_v34  ;;  %v1955_v34 = vmul.f32 %v1947_v19, %v5192_v54  ;;  %v1949_v54 = vmul.f32 %v1947_v19, %v5263_v33 }
 0x256   : > { %v5206_v0 = vpop.f32.mrf.mxu2  ;;  %v5208_v1 = vpop.f32.mrf.mxu3 }
 0x259   : > { %v5212_v3 = vpop.f32.mrf.mxu0  ;;  %v5214_v5 = vpop.f32.mrf.mxu1 }
 0x25a   : > { %6289 = vst [vmem:[#allocation32_spill] sm:$0xff] %v5212_v3  ;;  %v2086_v3 = vmul.f32 %v5259_v31, %v5146_v42  ;;  %v5305_v42 = vadd.f32 %v2088_v57, %v2034_v52  ;;  %v2003_v52 = vmul.f32 %v5234_v17, %v5261_v32  ;;  %v2077_v32 = vmul.f32 %v5257_v4, %v5220_v8 }
 0x25b   : > { %6290 = vst [vmem:[#allocation33_spill] sm:$0xff] %v5214_v5  ;;  %v2032_v5 = vadd.f32 %v2016_v11, %v1962_v35  ;;  %v5303_v11 = vadd.f32 %v2087_v46, %v2033_v47  ;;  %v2082_v46 = vmul.f32 %v5259_v31, %v5178_v60  ;;  %v2101_v47 = vadd.f32 %v2085_v62, %v2031_v50  ;;  %v5332_v50 = vpop.permute.xlu0 %2036 }
 0x25c   : > { %v1951_v60 = vmul.f32 %v1947_v19, %v5202_v51  ;;  %v2005_v62 = vmul.f32 %v5234_v17, %v5222_v9  ;;  %6303 = vst [vmem:[#allocation46_spill] sm:$0xff] %v5332_v50  ;;  %v2006_v19 = vmul.f32 %v5236_v18, %v5222_v9  ;;  %v2019_v27 = vadd.f32 %v2003_v52, %v1949_v54 }
 0x25d   : > { %v2102_v57 = vadd.f32 %v2086_v3, %v2032_v5  ;;  %v2009_v3 = vmul.f32 %v5234_v17, %v5176_v49  ;;  %v2010_v5 = vmul.f32 %v5236_v18, %v5176_v49  ;;  %v2073_v14 = vmul.f32 %v5257_v4, %v5332_v50 }
 0x25e   : > { %v5216_v6 = vpop.f32.mrf.mxu2  ;;  %v5218_v7 = vpop.f32.mrf.mxu3  ;;  %v2075_v9 = vmul.f32 %v5257_v4, %v5324_v56 }
 0x261   : > { %v5226_v12 = vpop.f32.mrf.mxu0  ;;  %v5228_v13 = vpop.f32.mrf.mxu1 }
 0x262   : > { %6292 = vst [vmem:[#allocation35_spill] sm:$0xff] %v5226_v12  ;;  %v5322_v12 = vpop.permute.xlu2 %2143 }
 0x263   : > { %6293 = vst [vmem:[#allocation36_spill] sm:$0xff] %v5228_v13  ;;  %v2084_v13 = vmul.f32 %v5259_v31, %v5160_v45  ;;  %v2007_v45 = vmul.f32 %v5234_v17, %v5188_v53  ;;  %v2008_v17 = vmul.f32 %v5236_v18, %v5188_v53  ;;  %v2026_v18 = vadd.f32 %v2010_v5, %v1956_v41 }
 0x264   : > { %6301 = vst [vmem:[#allocation44_spill] sm:$0xff] %v5322_v12  ;;  %v2097_v5 = vadd.f32 %v2081_v48, %v2027_v28 }
 0x265   : > { %v2023_v49 = vadd.f32 %v2007_v45, %v1953_v43  ;;  %v2076_v43 = vmul.f32 %v5259_v31, %v5324_v56  ;;  %v2089_v45 = vadd.f32 %v2073_v14, %v2019_v27 }
 0x266   : > { %v5242_v25 = vpop.f32.mrf.mxu2  ;;  %v5244_v26 = vpop.f32.mrf.mxu3 }
 0x269   : > { %v5250_v29 = vpop.f32.mrf.mxu0  ;;  %v5252_v30 = vpop.f32.mrf.mxu1 }
 0x26a   : > { %6294 = vst [vmem:[#allocation37_spill] sm:$0xff] %v5250_v29  ;;  %v1952_v29 = vmul.f32 %v5238_v20, %v5202_v51  ;;  %v2025_v51 = vadd.f32 %v2009_v3, %v1955_v34  ;;  %v2078_v34 = vmul.f32 %v5259_v31, %v5220_v8  ;;  %v2093_v3 = vadd.f32 %v2077_v32, %v2023_v49  ;;  %v2134_v38 = vpop.permute.xlu2 %2133 }
 0x26b   : > { %6295 = vst [vmem:[#allocation38_spill] sm:$0xff] %v5252_v30  ;;  %v2030_v30 = vadd.f32 %v2014_v39, %v1960_v36  ;;  %v2028_v36 = vadd.f32 %v2012_v15, %v1958_v37  ;;  %v1954_v37 = vmul.f32 %v5238_v20, %v5190_v58  ;;  %v2021_v15 = vadd.f32 %v2005_v62, %v1951_v60 }
 0x26c   : > { %v2074_v60 = vmul.f32 %v5259_v31, %v5332_v50  ;;  %v2022_v62 = vadd.f32 %v2006_v19, %v1952_v29 }
 0x26d   : > { %v2024_v58 = vadd.f32 %v2008_v17, %v1954_v37  ;;  %v2091_v41 = vadd.f32 %v2075_v9, %v2021_v15  ;;  %v6312_v15 = vld [vmem:[#allocation22_spill] sm:$0xff] }
 0x26e   : > { %v5277_v24 = vpop.f32.mrf.mxu2  ;;  %v5279_v22 = vpop.f32.mrf.mxu3  ;;  %v2092_v19 = vadd.f32 %v2076_v43, %v2022_v62  ;;  %v6314_v62 = vld [vmem:[#allocation19_spill] sm:$0xff] }
 0x26f   : > { %v2115_v56 = vadd.f32 %v2099_v44, %v5277_v24  ;;  %v2094_v49 = vadd.f32 %v2078_v34, %v2024_v58  ;;  %v6308_v24 = vld [vmem:[#allocation28_spill] sm:$0xff] }
 0x272   : > { %v5299_v10 = vpop.f32.mrf.mxu0  ;;  %v5301_v35 = vpop.f32.mrf.mxu1  ;;  %v6311_v14 = vld [vmem:[#allocation38_spill] sm:$0xff] }
 0x273   : > { %6299 = vst [vmem:[#allocation42_spill] sm:$0xff] %v5299_v10  ;;  %v2139_v10 = vpop.permute.xlu1 %2138 }
 0x274   : > { %6300 = vst [vmem:[#allocation43_spill] sm:$0xff] %v5301_v35  ;;  %v1950_v35 = vmul.f32 %v5238_v20, %v5263_v33  ;;  %v2079_v33 = vmul.f32 %v5257_v4, %v5275_v23  ;;  %v2080_v20 = vmul.f32 %v5259_v31, %v5275_v23  ;;  %v2100_v4 = vadd.f32 %v2084_v13, %v2030_v30 }
 0x275   : > { %v2098_v23 = vadd.f32 %v2082_v46, %v2028_v36  ;;  %v5369_v13 = vadd.f32 %v2089_v45, %v5180_v61  ;;  %v2109_v30 = vadd.f32 %v2093_v3, %v5206_v0  ;;  %v6309_v36 = vld [vmem:[#allocation37_spill] sm:$0xff]  ;;  %v6315_v45 = vld [vmem:[#allocation36_spill] sm:$0xff] }
 0x276   : > { %v2020_v53 = vadd.f32 %v2004_v59, %v1950_v35  ;;  %v2095_v59 = vadd.f32 %v2079_v33, %v2025_v51  ;;  %v2096_v35 = vadd.f32 %v2080_v20, %v2026_v18  ;;  %v2116_v17 = vadd.f32 %v2100_v4, %v5279_v22  ;;  %v6304_v33 = vld [vmem:[#allocation44_spill] sm:$0xff]  ;;  %v2124_v20 = vpop.permute.xlu2 %2123 }
 0x277   : > { %v1610_v39 = vpop.f32.mrf.mxu2  ;;  %v1651_v40 = vpop.f32.mrf.mxu3  ;;  %v2107_v51 = vadd.f32 %v2091_v41, %v5194_v55  ;;  %v2114_v44 = vadd.f32 %v2098_v23, %v5244_v26  ;;  %v2234_v34 = vadd.f32 %v6314_v62, %v6315_v45 }
 0x278   : > { %v2117_v12 = vadd.f32 %v2101_v47, %v1610_v39  ;;  %v2118_v50 = vadd.f32 %v2102_v57, %v1651_v40  ;;  %v2090_v29 = vadd.f32 %v2074_v60, %v2020_v53  ;;  %v2113_v53 = vadd.f32 %v2097_v5, %v5242_v25  ;;  %v6310_v39 = vld [vmem:[#allocation14_spill] sm:$0xff]  ;;  %v6313_v60 = vld [vmem:[#allocation35_spill] sm:$0xff]  ;;  %v6316_v5 = vld [vmem:[#allocation32_spill] sm:$0xff] }
 0x279   : > { %v2111_v0 = vadd.f32 %v2095_v59, %v5216_v6  ;;  %v2112_v25 = vadd.f32 %v2096_v35, %v5218_v7  ;;  %v5410_v7 = vadd.f32 %v6304_v33, %v2114_v44  ;;  %v2235_v40 = vadd.f32 %v6310_v39, %v6309_v36  ;;  %v6317_v59 = vld [vmem:[#allocation27_spill] sm:$0xff] }
 0x27a   : > { %v5378_v22 = vadd.f32 %v5204_v63, %v2117_v12  ;;  %v5381_v31 = vadd.f32 %v5204_v63, %v2118_v50  ;;  %v5396_v12 = vadd.f32 %v5232_v16, %v2115_v56  ;;  %v5399_v63 = vadd.f32 %v5232_v16, %v2116_v17  ;;  %v6306_v56 = vld [vmem:[#allocation11_spill] sm:$0xff] }
 0x27b   : > { %v1695_v54 = vpop.f32.mrf.mxu0  ;;  %v1736_v52 = vpop.f32.mrf.mxu1  ;;  %v5407_v6 = vadd.f32 %v6304_v33, %v2113_v53  ;;  %v6307_v23 = vld [vmem:[#allocation43_spill] sm:$0xff]  ;;  %v5429_v46 = vadd.f32 %v2139_v10, %v2111_v0  ;;  %v5431_v47 = vadd.f32 %v2139_v10, %v2112_v25  ;;  %v2236_v10 = vadd.f32 %v6310_v39, %v6311_v14  ;;  %v6324_v25 = vld [vmem:[#allocation24_spill] sm:$0xff] }
 0x27c   : > { %v2239_v26 = vadd.f32 %v5110_v21, %v1695_v54  ;;  %v2240_v32 = vadd.f32 %v5110_v21, %v1736_v52  ;;  %v6305_v21 = vld [vmem:[#allocation42_spill] sm:$0xff]  ;;  %vm2189_vm7 = vcmp.gt.f32.partialorder %v5378_v22, 0.0  ;;  %vm2190_vm8 = vcmp.gt.f32.partialorder %v5381_v31, 0.0  ;;  %v2129_v28 = vpop.permute.xlu1 %2128  ;;  %v6322_v53 = vld [vmem:[#allocation23_spill] sm:$0xff] }
 0x27d   : > { %v2237_v16 = vadd.f32 %v6306_v56, %v6305_v21  ;;  %vm2187_vm9 = vcmp.gt.f32.partialorder %v5396_v12, 0.0  ;;  %vm2188_vm10 = vcmp.gt.f32.partialorder %v5399_v63, 0.0  ;;  %v2106_v18 = vadd.f32 %v2090_v29, %v6312_v15  ;;  %v6318_v29 = vld [vmem:[#allocation33_spill] sm:$0xff]  ;;  %v6323_v44 = vld [vmem:[#allocation31_spill] sm:$0xff]  ;;  %v6327_v21 = vld [vmem:[#allocation18_spill] sm:$0xff] }
 0x27e   : > { %v5454_v54 = vadd.f32 %v2134_v38, %v2109_v30  ;;  %v2233_v43 = vadd.f32 %v6314_v62, %v6313_v60  ;;  %vm2185_vm11 = vcmp.gt.f32.partialorder %v5407_v6, 0.0  ;;  %vm2186_vm12 = vcmp.gt.f32.partialorder %v5410_v7, 0.0  ;;  %v2379_v14 = vld [vmem:[%s6202_s9 + $0x10] sm:$0xff] }
 0x27f   : > { %v2231_v35 = vadd.f32 %v6317_v59, %v6316_v5  ;;  %vm2183_vm14 = vcmp.gt.f32.partialorder %v5429_v46, 0.0  ;;  %vm2184_vm15 = vcmp.gt.f32.partialorder %v5431_v47, 0.0  ;;  %v5499_v17 = vadd.f32 %v2124_v20, %v5369_v13  ;;  %v5616_v60 = vld [vmem:[%s6201_s8 + $0x10] sm:$0xff]  ;;  %v5633_v5 = vld [vmem:[%s6201_s8 + $0x18] sm:$0xff] }
 0x280   : > { %v1613_v37 = vpop.f32.mrf.mxu2  ;;  %v1654_v27 = vpop.f32.mrf.mxu3  ;;  %vm2181_vm1 = vcmp.gt.f32.partialorder %v5454_v54, 0.0  ;;  %v2227_v0 = vadd.f32 %v6323_v44, %v6322_v53  ;;  %v5659_v53 = vld [vmem:[%s6201_s8 + $0x28] sm:$0xff] }
 0x281   : > { %v2119_v48 = vadd.f32 %v5303_v11, %v1613_v37  ;;  %v2120_v9 = vadd.f32 %v5305_v42, %v1654_v27  ;;  %v2108_v11 = vadd.f32 %v2092_v19, %v6308_v24  ;;  %v2232_v19 = vadd.f32 %v6317_v59, %v6318_v29  ;;  %v6319_v27 = vld [vmem:[#allocation29_spill] sm:$0xff]  ;;  %v2384_v24 = vld [vmem:[%s6202_s9 + $0x38] sm:$0xff] }
 0x282   : > { %v5501_v37 = vadd.f32 %v2124_v20, %v2106_v18  ;;  %vm2177_vm4 = vcmp.gt.f32.partialorder %v5499_v17, 0.0  ;;  %2838 = vperm.xlu0 %3900, %v2384_v24  }
 0x283   : > { %v5384_v61 = vadd.f32 %v5210_v2, %v2119_v48  ;;  %v5387_v58 = vadd.f32 %v5210_v2, %v2120_v9  ;;  %v5389_v42 = vpop.f32.mrf.mxu0  ;;  %v5391_v55 = vpop.f32.mrf.mxu1  ;;  %v2110_v2 = vadd.f32 %v2094_v49, %v5208_v1  ;;  %v2238_v1 = vadd.f32 %v6306_v56, %v6307_v23  ;;  %v6320_v49 = vld [vmem:[#allocation26_spill] sm:$0xff] }
 0x284   : > { %v5480_v3 = vadd.f32 %v2129_v28, %v2108_v11  ;;  %v2229_v48 = vadd.f32 %v6320_v49, %v6319_v27  ;;  %v6321_v9 = vld [vmem:[#allocation30_spill] sm:$0xff]  ;;  %v5646_v27 = vld [vmem:[%s6201_s8 + $0x20] sm:$0xff] }
 0x285   : > { %vm2191_vm5 = vcmp.gt.f32.partialorder %v5384_v61, 0.0  ;;  %vm2192_vm6 = vcmp.gt.f32.partialorder %v5387_v58, 0.0  ;;  %v5456_v52 = vadd.f32 %v2134_v38, %v2110_v2  ;;  %v5478_v38 = vadd.f32 %v2129_v28, %v2107_v51  ;;  %v6326_v2 = vld [vmem:[#allocation40_spill] sm:$0xff] }
 0x286   : > { %3704 = vmatpush.msk.msra.mxu2 %vm2191_vm5, %v5384_v61  ;;  %3712 = vmatpush.msk.msra.mxu3 %vm2192_vm6, %v5387_v58  ;;  %v2230_v51 = vadd.f32 %v6320_v49, %v6321_v9  ;;  %vm2180_vm0 = vcmp.gt.f32.partialorder %v5480_v3, 0.0  ;;  %v2226_v56 = vadd.f32 %v6326_v2, %v6327_v21  ;;  %v6335_v58 = vld [vmem:[#allocation12_spill] sm:$0xff] }
 0x287   : > { %3720 = vmatpush.msk.msrb.mxu0 %vm2191_vm5, %v2239_v26  ;;  %3728 = vmatpush.msk.msrb.mxu1 %vm2192_vm6, %v2240_v32  ;;  %vm6254_vm2 = vcmp.gt.f32.partialorder %v5456_v52, 0.0  ;;  %v2228_v26 = vadd.f32 %v6323_v44, %v6324_v25  ;;  %vm2179_vm3 = vcmp.gt.f32.partialorder %v5478_v38, 0.0  ;;  %v6325_v32 = vld [vmem:[#allocation17_spill] sm:$0xff]  ;;  %v6328_v44 = vld [vmem:[#allocation10_spill] sm:$0xff] }
 0x288   : > { %v5433_v57 = vpop.f32.mrf.mxu2  ;;  %v5435_v50 = vpop.f32.mrf.mxu3  ;;  %3705 = vmatpush.msk.msra.mxu2 %vm2189_vm7, %v5378_v22  ;;  %3713 = vmatpush.msk.msra.mxu3 %vm2190_vm8, %v5381_v31  ;;  %v2225_v33 = vadd.f32 %v6326_v2, %v6325_v32 }
 0x289   : > { %3721 = vmatpush.msk.msrb.mxu0 %vm2189_vm7, %v2237_v16  ;;  %3729 = vmatpush.msk.msrb.mxu1 %vm2190_vm8, %v2238_v1  ;;  %v5562_v1 = vld [vmem:[%s6201_s8] sm:$0xff] }
 0x28a   : > { %3706 = vmatpush.msk.msra.mxu2 %vm2187_vm9, %v5396_v12  ;;  %3714 = vmatpush.msk.msra.mxu3 %vm2188_vm10, %v5399_v63  ;;  %v6340_v63 = vld [vmem:[#allocation46_spill] sm:$0xff] }
 0x28b   : > { %v5468_v4 = vpop.f32.mrf.mxu0  ;;  %v5470_v41 = vpop.f32.mrf.mxu1  ;;  %3722 = vmatpush.msk.msrb.mxu0 %vm2187_vm9, %v2235_v40  ;;  %3730 = vmatpush.msk.msrb.mxu1 %vm2188_vm10, %v2236_v10  ;;  %v5596_v40 = vld [vmem:[%s6201_s8 + $0x8] sm:$0xff] }
 0x28c   : > { %3707 = vmatpush.msk.msra.mxu2 %vm2185_vm11, %v5407_v6  ;;  %3715 = vmatpush.msk.msra.mxu3 %vm2186_vm12, %v5410_v7  ;;  %v2376_v6 = vld [vmem:[%s6201_s8 + $0x38] sm:$0xff] }
 0x28d   : > { %3723 = vmatpush.msk.msrb.mxu0 %vm2185_vm11, %v2233_v43  ;;  %3731 = vmatpush.msk.msrb.mxu1 %vm2186_vm12, %v2234_v34 }
 0x28e   : > { %3708 = vmatpush.msk.msra.mxu2 %vm2183_vm14, %v5429_v46  ;;  %3716 = vmatpush.msk.msra.mxu3 %vm2184_vm15, %v5431_v47  ;;  %v6342_v46 = vld [vmem:[#allocation34_spill] sm:$0xff] }
 0x28f   : > { %3724 = vmatpush.msk.msrb.mxu0 %vm2183_vm14, %v2231_v35  ;;  %3732 = vmatpush.msk.msrb.mxu1 %vm2184_vm15, %v2232_v19 }
 0x290   : > { %v5519_v13 = vpop.f32.mrf.mxu2  ;;  %v5521_v30 = vpop.f32.mrf.mxu3  ;;  %3709 = vmatpush.msk.msra.mxu2 %vm2181_vm1, %v5454_v54  ;;  %3717 = vmatpush.msk.msra.mxu3 %vm6254_vm2, %v5456_v52 }
 0x291   : > { %3725 = vmatpush.msk.msrb.mxu0 %vm2181_vm1, %v2229_v48  ;;  %3733 = vmatpush.msk.msrb.mxu1 %vm6254_vm2, %v2230_v51  ;;  %vm2178_vm2 = vcmp.gt.f32.partialorder %v5501_v37, 0.0  ;;  %v2275_v47 = vadd.f32 %v6342_v46, %v5519_v13 }
 0x292   : > { %3710 = vmatpush.msk.msra.mxu2 %vm2179_vm3, %v5478_v38  ;;  %3718 = vmatpush.msk.msra.mxu3 %vm2180_vm0, %v5480_v3 }
 0x293   : > { %v5549_v16 = vpop.f32.mrf.mxu0  ;;  %v5551_v23 = vpop.f32.mrf.mxu1  ;;  %3726 = vmatpush.msk.msrb.mxu0 %vm2179_vm3, %v2227_v0  ;;  %3734 = vmatpush.msk.msrb.mxu1 %vm2180_vm0, %v2228_v26  ;;  %v6329_v26 = vld [vmem:[#allocation13_spill] sm:$0xff] }
 0x294   : > { %3711 = vmatpush.msk.msra.mxu2 %vm2177_vm4, %v5499_v17  ;;  %3719 = vmatpush.msk.msra.mxu3 %vm2178_vm2, %v5501_v37 }
 0x295   : > { %3727 = vmatpush.msk.msrb.mxu0 %vm2177_vm4, %v2225_v33  ;;  %3735 = vmatpush.msk.msrb.mxu1 %vm2178_vm2, %v2226_v56  ;;  %v6330_v33 = vld [vmem:[#allocation16_spill] sm:$0xff] }
 0x296   : > { %3500 = vmatmul.msk.f32.vlgmr.msra.gmra.mxu2 %vm910_vm13, %v5562_v1  ;;  %3508 = vmatmul.msk.f32.vlgmr.msra.gmra.mxu3 %vm910_vm13, %v5562_v1 }
 0x297   : > { %3516 = vmatmul.msk.f32.vlgmr.msrb.gmra.mxu0 %vm910_vm13, %v5562_v1  ;;  %3524 = vmatmul.msk.f32.vlgmr.msrb.gmra.mxu1 %vm910_vm13, %v5562_v1 }
 0x298   : > { %v5585_v11 = vpop.f32.mrf.mxu2  ;;  %v5587_v28 = vpop.f32.mrf.mxu3  ;;  %2813 = vperm.xlu0 %3900, %v2379_v14  }
 0x29b   : > { %v5589_v36 = vpop.f32.mrf.mxu0  ;;  %v5591_v39 = vpop.f32.mrf.mxu1 }
 0x29e   : > { %3501 = vmatmul.msk.f32.gmra.mxu2 %vm910_vm13, %v5596_v40  ;;  %3509 = vmatmul.msk.f32.gmra.mxu3 %vm910_vm13, %v5596_v40 }
 0x29f   : > { %3517 = vmatmul.msk.f32.gmra.mxu0 %vm910_vm13, %v5596_v40  ;;  %3525 = vmatmul.msk.f32.gmra.mxu1 %vm910_vm13, %v5596_v40 }
 0x2a0   : > { %v5609_v10 = vpop.f32.mrf.mxu2  ;;  %v5611_v15 = vpop.f32.mrf.mxu3 }
 0x2a3   : > { %v1850_v18 = vpop.f32.mrf.mxu0  ;;  %v1891_v20 = vpop.f32.mrf.mxu1 }
 0x2a6   : > { %3502 = vmatmul.msk.f32.gmra.mxu2 %vm910_vm13, %v5616_v60  ;;  %3510 = vmatmul.msk.f32.gmra.mxu3 %vm910_vm13, %v5616_v60 }
 0x2a7   : > { %3518 = vmatmul.msk.f32.gmra.mxu0 %vm910_vm13, %v5616_v60  ;;  %3526 = vmatmul.msk.f32.gmra.mxu1 %vm910_vm13, %v5616_v60 }
 0x2a8   : > { %v5626_v62 = vpop.f32.mrf.mxu2  ;;  %v5628_v43 = vpop.f32.mrf.mxu3 }
 0x2ab   : > { %v1853_v45 = vpop.f32.mrf.mxu0  ;;  %v1894_v34 = vpop.f32.mrf.mxu1 }
 0x2ac   : > { %v2331_v21 = vadd.f32 %v6330_v33, %v1853_v45  ;;  %v2332_v14 = vadd.f32 %v6330_v33, %v1894_v34  ;;  %v5694_v34 = vld [vmem:[%s6201_s8 + $0x30] sm:$0xff] }
 0x2ae   : > { %3503 = vmatmul.msk.f32.gmra.mxu2 %vm910_vm13, %v5633_v5  ;;  %3511 = vmatmul.msk.f32.gmra.mxu3 %vm910_vm13, %v5633_v5 }
 0x2af   : > { %3519 = vmatmul.msk.f32.gmra.mxu0 %vm910_vm13, %v5633_v5  ;;  %3527 = vmatmul.msk.f32.gmra.mxu1 %vm910_vm13, %v5633_v5 }
 0x2b0   : > { %v1771_v59 = vpop.f32.mrf.mxu2  ;;  %v1812_v35 = vpop.f32.mrf.mxu3 }
 0x2b3   : > { %v1856_v29 = vpop.f32.mrf.mxu0  ;;  %v1897_v19 = vpop.f32.mrf.mxu1 }
 0x2b4   : > { %v2333_v32 = vadd.f32 %v6329_v26, %v1856_v29  ;;  %v2334_v2 = vadd.f32 %v6329_v26, %v1897_v19  ;;  %v6331_v29 = vld [vmem:[#allocation8_spill] sm:$0xff] }
 0x2b6   : > { %3504 = vmatmul.msk.f32.gmra.mxu2 %vm910_vm13, %v5646_v27  ;;  %3512 = vmatmul.msk.f32.gmra.mxu3 %vm910_vm13, %v5646_v27 }
 0x2b7   : > { %3520 = vmatmul.msk.f32.gmra.mxu0 %vm910_vm13, %v5646_v27  ;;  %3528 = vmatmul.msk.f32.gmra.mxu1 %vm910_vm13, %v5646_v27 }
 0x2b8   : > { %v1774_v49 = vpop.f32.mrf.mxu2  ;;  %v1815_v48 = vpop.f32.mrf.mxu3 }
 0x2bb   : > { %v1859_v9 = vpop.f32.mrf.mxu0  ;;  %v1900_v51 = vpop.f32.mrf.mxu1 }
 0x2bc   : > { %v2335_v0 = vadd.f32 %v6328_v44, %v1859_v9  ;;  %v2336_v25 = vadd.f32 %v6328_v44, %v1900_v51  ;;  %v6332_v9 = vld [vmem:[#allocation21_spill] sm:$0xff] }
 0x2bd   : > { %v2329_v51 = vadd.f32 %v6332_v9, %v1850_v18  ;;  %v2330_v44 = vadd.f32 %v6332_v9, %v1891_v20  ;;  %v6333_v18 = vld [vmem:[#allocation9_spill] sm:$0xff] }
 0x2be   : > { %3505 = vmatmul.msk.f32.gmra.mxu2 %vm910_vm13, %v5659_v53  ;;  %3513 = vmatmul.msk.f32.gmra.mxu3 %vm910_vm13, %v5659_v53  ;;  %v2286_v20 = vadd.f32 %v6333_v18, %v1815_v48  ;;  %v2284_v48 = vadd.f32 %v6335_v58, %v1812_v35 }
 0x2bf   : > { %3752 = vmatpush.msk.msra.mxu0 %vm2191_vm5, %v2335_v0  ;;  %3760 = vmatpush.msk.msra.mxu1 %vm2192_vm6, %v2336_v25  ;;  %v2285_v0 = vadd.f32 %v6333_v18, %v1774_v49  ;;  %v6334_v25 = vld [vmem:[#allocation41_spill] sm:$0xff]  ;;  %v2283_v49 = vadd.f32 %v6335_v58, %v1771_v59  ;;  %v6336_v59 = vld [vmem:[#allocation15_spill] sm:$0xff] }
 0x2c0   : > { %v1777_v56 = vpop.f32.mrf.mxu2  ;;  %v1818_v24 = vpop.f32.mrf.mxu3  ;;  %3521 = vmatmul.msk.f32.gmra.mxu0 %vm910_vm13, %v5659_v53  ;;  %3529 = vmatmul.msk.f32.gmra.mxu1 %vm910_vm13, %v5659_v53  ;;  %v2327_v26 = vadd.f32 %v6334_v25, %v5589_v36  ;;  %v2328_v61 = vadd.f32 %v6334_v25, %v5591_v39  ;;  %v2325_v36 = vadd.f32 %v5220_v8, %v5549_v16 }
 0x2c1   : > { %3753 = vmatpush.msk.msra.mxu0 %vm2189_vm7, %v2333_v32  ;;  %3761 = vmatpush.msk.msra.mxu1 %vm2190_vm8, %v2334_v2  ;;  %v2287_v19 = vadd.f32 %v6331_v29, %v1777_v56  ;;  %v2288_v45 = vadd.f32 %v6331_v29, %v1818_v24  ;;  %v2326_v39 = vadd.f32 %v5220_v8, %v5551_v23  ;;  %v6337_v8 = vld [vmem:[#allocation45_spill] sm:$0xff]  ;;  %v6339_v23 = vld [vmem:[#allocation20_spill] sm:$0xff] }
 0x2c2   : > { %v2281_v35 = vadd.f32 %v6336_v59, %v5626_v62  ;;  %v2282_v22 = vadd.f32 %v6336_v59, %v5628_v43  ;;  %v2323_v31 = vadd.f32 %v6337_v8, %v5468_v4  ;;  %v2324_v16 = vadd.f32 %v6337_v8, %v5470_v41 }
 0x2c3   : > { %3754 = vmatpush.msk.msra.mxu0 %vm2187_vm9, %v2331_v21  ;;  %3762 = vmatpush.msk.msra.mxu1 %vm2188_vm10, %v2332_v14  ;;  %v2279_v62 = vadd.f32 %v6339_v23, %v5609_v10  ;;  %v2280_v12 = vadd.f32 %v6339_v23, %v5611_v15  ;;  %v2321_v4 = vadd.f32 %v6340_v63, %v5389_v42  ;;  %v6341_v42 = vld [vmem:[#allocation25_spill] sm:$0xff] }
 0x2c4   : > { %3736 = vmatpush.msk.msrb.mxu2 %vm2191_vm5, %v2287_v19  ;;  %3744 = vmatpush.msk.msrb.mxu3 %vm2192_vm6, %v2288_v45  ;;  %vm6338_vm5 = vcmp.gt.f32.partialorder %v5456_v52, 0.0  ;;  %v2322_v41 = vadd.f32 %v6340_v63, %v5391_v55  ;;  %v2277_v7 = vadd.f32 %v6341_v42, %v5585_v11  ;;  %v2278_v55 = vadd.f32 %v6341_v42, %v5587_v28  ;;  %v6344_v11 = vld [vmem:[#allocation39_spill] sm:$0xff]  ;;  %v2834_v19 = vpop.permute.xlu1 %2833  ;;  %v2829_v45 = vpop.permute.xlu2 %2828 }
 0x2c5   : > { %3755 = vmatpush.msk.msra.mxu0 %vm2185_vm11, %v2329_v51  ;;  %3763 = vmatpush.msk.msra.mxu1 %vm2186_vm12, %v2330_v44  ;;  %v2276_v10 = vadd.f32 %v6342_v46, %v5521_v30  ;;  %vm6343_vm6 = vmmov %vm6338_vm5  ;;  %v2273_v28 = vadd.f32 %v6344_v11, %v5433_v57  ;;  %v2274_v13 = vadd.f32 %v6344_v11, %v5435_v50  ;;  %v3002_v57 = vld [vmem:[#allocation3] sm:$0x1] }
 0x2c6   : > { %3506 = vmatmul.msk.f32.gmra.mxu2 %vm910_vm13, %v5694_v34  ;;  %3514 = vmatmul.msk.f32.gmra.mxu3 %vm910_vm13, %v5694_v34 }
 0x2c7   : > { %3737 = vmatpush.msk.msrb.mxu2 %vm2189_vm7, %v2285_v0  ;;  %3745 = vmatpush.msk.msrb.mxu3 %vm2190_vm8, %v2286_v20 }
 0x2c8   : > { %3756 = vmatpush.msk.msra.mxu0 %vm2183_vm14, %v2327_v26  ;;  %3764 = vmatpush.msk.msra.mxu1 %vm2184_vm15, %v2328_v61 }
 0x2c9   : > { %3738 = vmatpush.msk.msrb.mxu2 %vm2187_vm9, %v2283_v49  ;;  %3746 = vmatpush.msk.msrb.mxu3 %vm2188_vm10, %v2284_v48 }
 0x2ca   : > { %3757 = vmatpush.msk.msra.mxu0 %vm2181_vm1, %v2325_v36  ;;  %3765 = vmatpush.msk.msra.mxu1 %vm6338_vm5, %v2326_v39 }
 0x2cb   : > { %3739 = vmatpush.msk.msrb.mxu2 %vm2185_vm11, %v2281_v35  ;;  %3747 = vmatpush.msk.msrb.mxu3 %vm2186_vm12, %v2282_v22 }
 0x2cc   : > { %3758 = vmatpush.msk.msra.mxu0 %vm2179_vm3, %v2323_v31  ;;  %3766 = vmatpush.msk.msra.mxu1 %vm2180_vm0, %v2324_v16  ;;  %v2824_v0 = vpop.permute.xlu1 %2823  ;;  %v2819_v26 = vpop.permute.xlu2 %2818 }
 0x2cd   : > { %3740 = vmatpush.msk.msrb.mxu2 %vm2183_vm14, %v2279_v62  ;;  %3748 = vmatpush.msk.msrb.mxu3 %vm2184_vm15, %v2280_v12 }
 0x2ce   : > { %3759 = vmatpush.msk.msra.mxu0 %vm2177_vm4, %v2321_v4  ;;  %3767 = vmatpush.msk.msra.mxu1 %vm2178_vm2, %v2322_v41 }
 0x2cf   : > { %3507 = vmatmul.msk.f32.gmra.mxu2 %vm910_vm13, %v2376_v6  ;;  %3515 = vmatmul.msk.f32.gmra.mxu3 %vm910_vm13, %v2376_v6 }
 0x2d0   : > { %3741 = vmatpush.msk.msrb.mxu2 %vm2181_vm1, %v2277_v7  ;;  %3749 = vmatpush.msk.msrb.mxu3 %vm6343_vm6, %v2278_v55 }
 0x2d1   : > { %3522 = vmatmul.msk.f32.gmra.mxu0 %vm910_vm13, %v5694_v34  ;;  %3530 = vmatmul.msk.f32.gmra.mxu1 %vm910_vm13, %v5694_v34 }
 0x2d2   : > { %3742 = vmatpush.msk.msrb.mxu2 %vm2179_vm3, %v2275_v47  ;;  %3750 = vmatpush.msk.msrb.mxu3 %vm2180_vm0, %v2276_v10 }
 0x2d3   : > { %3232 = vperm.xlu0 %3900, %v3002_v57  }
 0x2d4   : > { %3743 = vmatpush.msk.msrb.mxu2 %vm2177_vm4, %v2273_v28  ;;  %3751 = vmatpush.msk.msrb.mxu3 %vm2178_vm2, %v2274_v13  ;;  %v2809_v41 = vpop.permute.xlu1 %2808  ;;  %v6006_v13 = vld [vmem:[%s6203_s10] sm:$0xff] }
 0x2d7   : > { %3532 = vmatmul.msk.f32.vlgmr.msrb.gmra.mxu2 %vm910_vm13, %v5562_v1  ;;  %3540 = vmatmul.msk.f32.vlgmr.msrb.gmra.mxu3 %vm910_vm13, %v5562_v1 }
 0x2d9   : > { %3523 = vmatmul.msk.f32.gmra.mxu0 %vm910_vm13, %v2376_v6  ;;  %3531 = vmatmul.msk.f32.gmra.mxu1 %vm910_vm13, %v2376_v6 }
 0x2df   : > { %3533 = vmatmul.msk.f32.gmra.mxu2 %vm910_vm13, %v5596_v40  ;;  %3541 = vmatmul.msk.f32.gmra.mxu3 %vm910_vm13, %v5596_v40 }
 0x2e1   : > { %3548 = vmatmul.msk.f32.vlgmr.msra.gmra.mxu0 %vm910_vm13, %v5562_v1  ;;  %3556 = vmatmul.msk.f32.vlgmr.msra.gmra.mxu1 %vm910_vm13, %v5562_v1 }
 0x2e7   : > { %3534 = vmatmul.msk.f32.gmra.mxu2 %vm910_vm13, %v5616_v60  ;;  %3542 = vmatmul.msk.f32.gmra.mxu3 %vm910_vm13, %v5616_v60 }
 0x2e9   : > { %3549 = vmatmul.msk.f32.gmra.mxu0 %vm910_vm13, %v5596_v40  ;;  %3557 = vmatmul.msk.f32.gmra.mxu1 %vm910_vm13, %v5596_v40 }
 0x2ef   : > { %3535 = vmatmul.msk.f32.gmra.mxu2 %vm910_vm13, %v5633_v5  ;;  %3543 = vmatmul.msk.f32.gmra.mxu3 %vm910_vm13, %v5633_v5 }
 0x2f1   : > { %3550 = vmatmul.msk.f32.gmra.mxu0 %vm910_vm13, %v5616_v60  ;;  %3558 = vmatmul.msk.f32.gmra.mxu1 %vm910_vm13, %v5616_v60 }
 0x2f4   : > { %v2839_v44 = vpop.permute.xlu0 %2838 }
 0x2f7   : > { %3536 = vmatmul.msk.f32.gmra.mxu2 %vm910_vm13, %v5646_v27  ;;  %3544 = vmatmul.msk.f32.gmra.mxu3 %vm910_vm13, %v5646_v27 }
 0x2f9   : > { %3551 = vmatmul.msk.f32.gmra.mxu0 %vm910_vm13, %v5633_v5  ;;  %3559 = vmatmul.msk.f32.gmra.mxu1 %vm910_vm13, %v5633_v5 }
 0x2ff   : > { %3537 = vmatmul.msk.f32.gmra.mxu2 %vm910_vm13, %v5659_v53  ;;  %3545 = vmatmul.msk.f32.gmra.mxu3 %vm910_vm13, %v5659_v53 }
 0x301   : > { %3552 = vmatmul.msk.f32.gmra.mxu0 %vm910_vm13, %v5646_v27  ;;  %3560 = vmatmul.msk.f32.gmra.mxu1 %vm910_vm13, %v5646_v27 }
 0x307   : > { %3538 = vmatmul.msk.f32.gmra.mxu2 %vm910_vm13, %v5694_v34  ;;  %3546 = vmatmul.msk.f32.gmra.mxu3 %vm910_vm13, %v5694_v34 }
 0x309   : > { %3553 = vmatmul.msk.f32.gmra.mxu0 %vm910_vm13, %v5659_v53  ;;  %3561 = vmatmul.msk.f32.gmra.mxu1 %vm910_vm13, %v5659_v53 }
 0x30a   : > { %v2814_v31 = vpop.permute.xlu0 %2813 }
 0x30f   : > { %3539 = vmatmul.msk.f32.gmra.mxu2 %vm910_vm13, %v2376_v6  ;;  %3547 = vmatmul.msk.f32.gmra.mxu3 %vm910_vm13, %v2376_v6 }
 0x311   : > { %3554 = vmatmul.msk.f32.gmra.mxu0 %vm910_vm13, %v5694_v34  ;;  %3562 = vmatmul.msk.f32.gmra.mxu1 %vm910_vm13, %v5694_v34 }
 0x314   : > { %v5861_v50 = vpop.f32.mrf.mxu0  ;;  %v5863_v54 = vpop.f32.mrf.mxu1 }
 0x319   : > { %v5865_v52 = vpop.f32.mrf.mxu2  ;;  %v5867_v38 = vpop.f32.mrf.mxu3  ;;  %3555 = vmatmul.msk.f32.gmra.mxu0 %vm910_vm13, %v2376_v6  ;;  %3563 = vmatmul.msk.f32.gmra.mxu1 %vm910_vm13, %v2376_v6 }
 0x31a   : > { %v2804_v6 = vpop.permute.xlu2 %2803 }
 0x31b   : > { %v5978_v47 = vadd.f32 %v2804_v6, %v5865_v52  ;;  %v5981_v10 = vadd.f32 %v2804_v6, %v5867_v38 }
 0x31c   : > { %v5871_v3 = vpop.f32.mrf.mxu0  ;;  %v5873_v17 = vpop.f32.mrf.mxu1 }
 0x31d   : > { %vm2857_vm6 = vcmp.gt.f32.partialorder %v5978_v47, 0.0 }
 0x321   : > { %v5875_v37 = vpop.f32.mrf.mxu2  ;;  %v5877_v30 = vpop.f32.mrf.mxu3 }
 0x322   : > { %v5960_v42 = vadd.f32 %v2809_v41, %v5875_v37  ;;  %v5963_v7 = vadd.f32 %v2809_v41, %v5877_v30 }
 0x324   : > { %v5879_v1 = vpop.f32.mrf.mxu0  ;;  %v5881_v40 = vpop.f32.mrf.mxu1  ;;  %vm2859_vm4 = vcmp.gt.f32.partialorder %v5960_v42, 0.0  ;;  %vm2860_vm5 = vcmp.gt.f32.partialorder %v5963_v7, 0.0 }
 0x329   : > { %v2496_v15 = vpop.f32.mrf.mxu2  ;;  %v2537_v60 = vpop.f32.mrf.mxu3 }
 0x32a   : > { %v5949_v63 = vadd.f32 %v2814_v31, %v2496_v15  ;;  %v5951_v4 = vadd.f32 %v2814_v31, %v2537_v60 }
 0x32c   : > { %v5883_v43 = vpop.f32.mrf.mxu0  ;;  %v5885_v5 = vpop.f32.mrf.mxu1  ;;  %vm2861_vm3 = vcmp.gt.f32.partialorder %v5949_v63, 0.0  ;;  %vm6255_vm0 = vcmp.gt.f32.partialorder %v5951_v4, 0.0 }
 0x331   : > { %v2499_v27 = vpop.f32.mrf.mxu2  ;;  %v2540_v53 = vpop.f32.mrf.mxu3 }
 0x332   : > { %v5931_v16 = vadd.f32 %v2819_v26, %v2499_v27  ;;  %v5933_v23 = vadd.f32 %v2819_v26, %v2540_v53 }
 0x334   : > { %v5887_v33 = vpop.f32.mrf.mxu0  ;;  %v5889_v21 = vpop.f32.mrf.mxu1  ;;  %vm2863_vm1 = vcmp.gt.f32.partialorder %v5931_v16, 0.0  ;;  %vm2864_vm2 = vcmp.gt.f32.partialorder %v5933_v23, 0.0 }
 0x339   : > { %v2502_v32 = vpop.f32.mrf.mxu2  ;;  %v2543_v2 = vpop.f32.mrf.mxu3 }
 0x33a   : > { %v5919_v22 = vadd.f32 %v2824_v0, %v2502_v32  ;;  %v5921_v8 = vadd.f32 %v2824_v0, %v2543_v2 }
 0x33c   : > { %vm6256_vm14 = vcmp.gt.f32.partialorder %v5919_v22, 0.0  ;;  %vm2866_vm15 = vcmp.gt.f32.partialorder %v5921_v8, 0.0 }
 0x33d   : > { %v5891_v14 = vpop.f32.mrf.mxu0  ;;  %v5893_v29 = vpop.f32.mrf.mxu1 }
 0x341   : > { %v2505_v56 = vpop.f32.mrf.mxu2  ;;  %v2546_v24 = vpop.f32.mrf.mxu3 }
 0x342   : > { %v5907_v36 = vadd.f32 %v2829_v45, %v2505_v56  ;;  %v5909_v39 = vadd.f32 %v2829_v45, %v2546_v24 }
 0x344   : > { %vm6257_vm11 = vcmp.gt.f32.partialorder %v5907_v36, 0.0  ;;  %vm2868_vm12 = vcmp.gt.f32.partialorder %v5909_v39, 0.0 }
 0x345   : > { %v3233_v45 = vpop.permute.xlu0 %3232 }
 0x349   : > { %v2508_v9 = vpop.f32.mrf.mxu2  ;;  %v2549_v51 = vpop.f32.mrf.mxu3 }
 0x34a   : > { %v5899_v61 = vadd.f32 %v2834_v19, %v2508_v9  ;;  %v5901_v58 = vadd.f32 %v2834_v19, %v2549_v51  ;;  %v3235_v9 = vperm.slane %v3233_v45, 0  ;;  %v3244_v51 = vlaneseq }
 0x34c   : > { %vm2869_vm9 = vcmp.gt.f32.partialorder %v5899_v61, 0.0  ;;  %vm2870_vm10 = vcmp.gt.f32.partialorder %v5901_v58, 0.0 }
 0x34e   : > { %v5895_v34 = vpop.f32.mrf.mxu0  ;;  %v5897_v18 = vpop.f32.mrf.mxu1 }
 0x352   : > { %v2511_v20 = vpop.f32.mrf.mxu2  ;;  %v2552_v25 = vpop.f32.mrf.mxu3 }
 0x353   : > { %v5903_v49 = vadd.f32 %v2839_v44, %v2511_v20  ;;  %v5905_v48 = vadd.f32 %v2839_v44, %v2552_v25 }
 0x355   : > { %vm2871_vm7 = vcmp.gt.f32.partialorder %v5903_v49, 0.0  ;;  %vm2872_vm8 = vcmp.gt.f32.partialorder %v5905_v48, 0.0 }
 0x356   : > { %3768 = vmatpush.msk.msra.mxu2 %vm2871_vm7, %v5903_v49  ;;  %3776 = vmatpush.msk.msra.mxu3 %vm2872_vm8, %v5905_v48  ;;  %v2593_v59 = vpop.f32.mrf.mxu0  ;;  %v2634_v35 = vpop.f32.mrf.mxu1 }
 0x358   : > { %3769 = vmatpush.msk.msra.mxu2 %vm2869_vm9, %v5899_v61  ;;  %3777 = vmatpush.msk.msra.mxu3 %vm2870_vm10, %v5901_v58 }
 0x35a   : > { %v5937_v62 = vpop.f32.mrf.mxu2  ;;  %v5939_v12 = vpop.f32.mrf.mxu3  ;;  %3770 = vmatpush.msk.msra.mxu2 %vm6257_vm11, %v5907_v36  ;;  %3778 = vmatpush.msk.msra.mxu3 %vm2868_vm12, %v5909_v39 }
 0x35c   : > { %3771 = vmatpush.msk.msra.mxu2 %vm6256_vm14, %v5919_v22  ;;  %3779 = vmatpush.msk.msra.mxu3 %vm2866_vm15, %v5921_v8 }
 0x35e   : > { %3772 = vmatpush.msk.msra.mxu2 %vm2863_vm1, %v5931_v16  ;;  %3780 = vmatpush.msk.msra.mxu3 %vm2864_vm2, %v5933_v23  ;;  %v5973_v55 = vpop.f32.mrf.mxu0  ;;  %v5975_v46 = vpop.f32.mrf.mxu1 }
 0x360   : > { %3773 = vmatpush.msk.msra.mxu2 %vm2861_vm3, %v5949_v63  ;;  %3781 = vmatpush.msk.msra.mxu3 %vm6255_vm0, %v5951_v4  ;;  %vm2858_vm0 = vcmp.gt.f32.partialorder %v5981_v10, 0.0 }
 0x362   : > { %v5993_v11 = vpop.f32.mrf.mxu2  ;;  %v5995_v28 = vpop.f32.mrf.mxu3  ;;  %3774 = vmatpush.msk.msra.mxu2 %vm2859_vm4, %v5960_v42  ;;  %3782 = vmatpush.msk.msra.mxu3 %vm2860_vm5, %v5963_v7 }
 0x364   : > { %3775 = vmatpush.msk.msra.mxu2 %vm2857_vm6, %v5978_v47  ;;  %3783 = vmatpush.msk.msra.mxu3 %vm2858_vm0, %v5981_v10 }
 0x365   : > { %3564 = vmatmul.msk.f32.vlgmr.msra.gmra.mxu2 %vm910_vm13, %v6006_v13  ;;  %3565 = vmatmul.msk.f32.vlgmr.msra.gmra.mxu3 %vm910_vm13, %v6006_v13 }
 0x366   : > { %3784 = vmatpush.msk.msrb.mxu2 %vm2871_vm7, %v2593_v59  ;;  %3792 = vmatpush.msk.msrb.mxu3 %vm2872_vm8, %v2634_v35  ;;  %v6024_v57 = vpop.f32.mrf.mxu0  ;;  %v6026_v52 = vpop.f32.mrf.mxu1 }
 0x368   : > { %3785 = vmatpush.msk.msrb.mxu2 %vm2869_vm9, %v5895_v34  ;;  %3793 = vmatpush.msk.msrb.mxu3 %vm2870_vm10, %v5897_v18 }
 0x36a   : > { %3786 = vmatpush.msk.msrb.mxu2 %vm6257_vm11, %v5891_v14  ;;  %3794 = vmatpush.msk.msrb.mxu3 %vm2868_vm12, %v5893_v29  ;;  %v2660_v38 = vpop.f32.mrf.mxu2  ;;  %v2701_v37 = vpop.f32.mrf.mxu3 }
 0x36c   : > { %3787 = vmatpush.msk.msrb.mxu2 %vm6256_vm14, %v5887_v33  ;;  %3795 = vmatpush.msk.msrb.mxu3 %vm2866_vm15, %v5889_v21  ;;  %vm6345_vm14 = vcmp.gt.f32.partialorder %v5951_v4, 0.0 }
 0x36e   : > { %3788 = vmatpush.msk.msrb.mxu2 %vm2863_vm1, %v5883_v43  ;;  %3796 = vmatpush.msk.msrb.mxu3 %vm2864_vm2, %v5885_v5  ;;  %v2742_v30 = vpop.f32.mrf.mxu0  ;;  %v2783_v15 = vpop.f32.mrf.mxu1 }
 0x370   : > { %3789 = vmatpush.msk.msrb.mxu2 %vm2861_vm3, %v5879_v1  ;;  %3797 = vmatpush.msk.msrb.mxu3 %vm6345_vm14, %v5881_v40  ;;  %vm6346_vm14 = vcmp.gt.f32.partialorder %v5919_v22, 0.0 }
 0x372   : > { %3790 = vmatpush.msk.msrb.mxu2 %vm2859_vm4, %v5871_v3  ;;  %3798 = vmatpush.msk.msrb.mxu3 %vm2860_vm5, %v5873_v17  ;;  %v2663_v60 = vpop.f32.mrf.mxu2  ;;  %v2704_v43 = vpop.f32.mrf.mxu3 }
 0x374   : > { %3791 = vmatpush.msk.msrb.mxu2 %vm2857_vm6, %v5861_v50  ;;  %3799 = vmatpush.msk.msrb.mxu3 %vm2858_vm0, %v5863_v54 }
 0x375   : > { %3566 = vmatmul.msk.f32.vlgmr.msrb.gmra.mxu2 %vm910_vm13, %v6006_v13  ;;  %3567 = vmatmul.msk.f32.vlgmr.msrb.gmra.mxu3 %vm910_vm13, %v6006_v13 }
 0x376   : > { %v2745_v3 = vpop.f32.mrf.mxu0  ;;  %v2786_v1 = vpop.f32.mrf.mxu1 }
 0x37a   : > { %v2666_v40 = vpop.f32.mrf.mxu2  ;;  %v2707_v17 = vpop.f32.mrf.mxu3 }
 0x37e   : > { %v2748_v5 = vpop.f32.mrf.mxu0  ;;  %v2789_v27 = vpop.f32.mrf.mxu1 }
 0x382   : > { %v2669_v53 = vpop.f32.mrf.mxu2  ;;  %v2710_v32 = vpop.f32.mrf.mxu3 }
 0x386   : > { %v2751_v33 = vpop.f32.mrf.mxu0  ;;  %v2792_v21 = vpop.f32.mrf.mxu1 }
 0x38a   : > { %v2672_v2 = vpop.f32.mrf.mxu2  ;;  %v2713_v50 = vpop.f32.mrf.mxu3 }
 0x38e   : > { %v2754_v24 = vpop.f32.mrf.mxu0  ;;  %v2795_v14 = vpop.f32.mrf.mxu1 }
 0x392   : > { %v2675_v56 = vpop.f32.mrf.mxu2  ;;  %v2716_v54 = vpop.f32.mrf.mxu3 }
 0x393   : > { %3800 = vmatpush.msk.msra.mxu2 %vm2871_vm7, %v2675_v56  ;;  %3808 = vmatpush.msk.msra.mxu3 %vm2872_vm8, %v2716_v54 }
 0x395   : > { %3801 = vmatpush.msk.msra.mxu2 %vm2869_vm9, %v2672_v2  ;;  %3809 = vmatpush.msk.msra.mxu3 %vm2870_vm10, %v2713_v50 }
 0x396   : > { %v2757_v29 = vpop.f32.mrf.mxu0  ;;  %v2798_v19 = vpop.f32.mrf.mxu1 }
 0x397   : > { %3802 = vmatpush.msk.msra.mxu2 %vm6257_vm11, %v2669_v53  ;;  %3810 = vmatpush.msk.msra.mxu3 %vm2868_vm12, %v2710_v32  ;;  %vm6347_vm11 = vcmp.gt.f32.partialorder %v5951_v4, 0.0 }
 0x399   : > { %3803 = vmatpush.msk.msra.mxu2 %vm6346_vm14, %v2666_v40  ;;  %3811 = vmatpush.msk.msra.mxu3 %vm2866_vm15, %v2707_v17 }
 0x39b   : > { %3804 = vmatpush.msk.msra.mxu2 %vm2863_vm1, %v2663_v60  ;;  %3812 = vmatpush.msk.msra.mxu3 %vm2864_vm2, %v2704_v43 }
 0x39d   : > { %3805 = vmatpush.msk.msra.mxu2 %vm2861_vm3, %v2660_v38  ;;  %3813 = vmatpush.msk.msra.mxu3 %vm6347_vm11, %v2701_v37  ;;  %vm6348_vm11 = vcmp.gt.f32.partialorder %v5907_v36, 0.0 }
 0x39f   : > { %3806 = vmatpush.msk.msra.mxu2 %vm2859_vm4, %v5993_v11  ;;  %3814 = vmatpush.msk.msra.mxu3 %vm2860_vm5, %v5995_v28 }
 0x3a1   : > { %3807 = vmatpush.msk.msra.mxu2 %vm2857_vm6, %v5937_v62  ;;  %3815 = vmatpush.msk.msra.mxu3 %vm2858_vm0, %v5939_v12 }
 0x3a2   : > { %3568 = vmatmul.msk.f32.vlgmr.msra.gmra.mxu2 %vm910_vm13, %v6006_v13  ;;  %3569 = vmatmul.msk.f32.vlgmr.msra.gmra.mxu3 %vm910_vm13, %v6006_v13 }
 0x3a3   : > { %3816 = vmatpush.msk.msrb.mxu2 %vm2871_vm7, %v2757_v29  ;;  %3824 = vmatpush.msk.msrb.mxu3 %vm2872_vm8, %v2798_v19  ;;  %vm6349_vm7 = vmmov %vm6346_vm14  ;;  %vm6350_vm8 = vcmp.gt.f32.partialorder %v5951_v4, 0.0 }
 0x3a5   : > { %3817 = vmatpush.msk.msrb.mxu2 %vm2869_vm9, %v2754_v24  ;;  %3825 = vmatpush.msk.msrb.mxu3 %vm2870_vm10, %v2795_v14  ;;  %vm3241_vm9 = vcmask 1040384   ;;  %vm3246_vm10 = vcmp.lt.s32.totalorder %v3244_v51, 256 }
 0x3a7   : > { %3818 = vmatpush.msk.msrb.mxu2 %vm6348_vm11, %v2751_v33  ;;  %3826 = vmatpush.msk.msrb.mxu3 %vm2868_vm12, %v2792_v21  ;;  %vm3263_vm12 = vcmask 1043459  }
 0x3a9   : > { %3819 = vmatpush.msk.msrb.mxu2 %vm6349_vm7, %v2748_v5  ;;  %3827 = vmatpush.msk.msrb.mxu3 %vm2866_vm15, %v2789_v27  ;;  %vm3265_vm15 = vcmask 1044483  }
 0x3ab   : > { %3820 = vmatpush.msk.msrb.mxu2 %vm2863_vm1, %v2745_v3  ;;  %3828 = vmatpush.msk.msrb.mxu3 %vm2864_vm2, %v2786_v1  ;;  %vm3269_vm1 = vcmp.lt.s32.totalorder %v3244_v51, 768  ;;  %vm6351_vm2 = vcmask 1042432  }
 0x3ad   : > { %3821 = vmatpush.msk.msrb.mxu2 %vm2861_vm3, %v2742_v30  ;;  %3829 = vmatpush.msk.msrb.mxu3 %vm6350_vm8, %v2783_v15 }
 0x3af   : > { %3822 = vmatpush.msk.msrb.mxu2 %vm2859_vm4, %v6024_v57  ;;  %3830 = vmatpush.msk.msrb.mxu3 %vm2860_vm5, %v6026_v52 }
 0x3b1   : > { %3823 = vmatpush.msk.msrb.mxu2 %vm2857_vm6, %v5973_v55  ;;  %3831 = vmatpush.msk.msrb.mxu3 %vm2858_vm0, %v5975_v46 }
 0x3b2   : > { %3570 = vmatmul.msk.f32.vlgmr.msrb.gmra.mxu2 %vm910_vm13, %v6006_v13  ;;  %3571 = vmatmul.msk.f32.vlgmr.msrb.gmra.mxu3 %vm910_vm13, %v6006_v13  ;;  %vm3261_vm13 = vcmask 1041408  }
 0x3e8   : > { %v3087_v44 = vpop.f32.mrf.mxu2  ;;  %v3107_v34 = vpop.f32.mrf.mxu3 }
 0x3e9   : > { %v3237_v18 = vadd.f32 %v3235_v9, %v3107_v34  ;;  %v3236_v0 = vadd.f32 %v3235_v9, %v3087_v44 }
 0x3eb   : > { %v3240_v20 = vrot.slane %v3237_v18, 7 }
 0x3ed   : > { %v3242_v25 = vsel %vm3241_vm9, %v3236_v0, %v3240_v20 }
 0x3ee   : > { %3248 = vst.msk [vmem:[%s409_s30] sm:$0x3] %vm3246_vm10, %v3242_v25 }
 0x3f8   : > { %v3127_v26 = vpop.f32.mrf.mxu2  ;;  %v3147_v61 = vpop.f32.mrf.mxu3 }
 0x3f9   : > { %v3255_v48 = vrot.slane %v3147_v61, 7 }
 0x3fb   : > { %v3260_v31 = vsel %vm3241_vm9, %v3127_v26, %v3255_v48 }
 0x425   : > { %v3187_v58 = vpop.f32.mrf.mxu3  ;;  %v3167_v49 = vpop.f32.mrf.mxu2 }
 0x426   : > { %v3256_v36 = vrot.slane %v3167_v49, 6  ;;  %v3257_v35 = vrot.slane %v3187_v58, 5 }
 0x428   : > { %v3262_v23 = vsel %vm3261_vm13, %v3260_v31, %v3256_v36 }
 0x435   : > { %v3207_v39 = vpop.f32.mrf.mxu2  ;;  %v3227_v59 = vpop.f32.mrf.mxu3 }
 0x436   : > { %v3258_v22 = vrot.slane %v3207_v39, 4  ;;  %v3259_v8 = vrot.slane %v3227_v59, 3 }
 0x438   : > { %v3264_v16 = vsel %vm3263_vm12, %v3257_v35, %v3258_v22 }
 0x439   : > { %v3266_v62 = vsel %vm3265_vm15, %v3264_v16, %v3259_v8 }
 0x43a   : > { %v3267_v12 = vsel %vm6351_vm2, %v3262_v23, %v3266_v62 }
 0x43b   : > { %3271 = vst.msk [vmem:[%s409_s30 + $0x2] sm:$0x3f] %vm3269_vm1, %v3267_v12 }
 0x43c   : > { %3928 = shalt.err (!%p3925_p3)
}
 0x43d   : > { %3832 = dma.vmem_to_hbm [thread:$0]  (%p4074_p5), %s3286_s20, 128, %s3288_s21, %s3273_s11  }
 0x43e PF: > { %p3838_p4 = scmp.ge.s32.totalorder %s3963_s26, 2  ;;  %s3299_s13 = sand.u32 1, %s3951_s23  }
 0x43f   : > { %s3300_s30 = scalar_lea.sflag [#allocation5], %s3299_s13 }
 0x440   : > { %p3835_p7 = pnand %p3838_p4, %p4078_p6 }
 0x442   : > { %p3836_p8 = pneg %p3835_p7 }
 0x444   : > { %3946 = dma.done.wait (%p3836_p8), %s3300_s30, 128  }
 0x445   : > { %3948 = vsyncadd (%p3836_p8), %s3300_s30, 4294967168  ;;  %s6352_s22 = sld [smem:[#allocation7_spill]]  ;;  %p24_p9 = scmp.ge.s32.totalorder %s4061_s28, 6  }
 0x446   : > { %s6353_s23 = smov %s3955_s24  ;;  %s6354_s24 = smov %s3959_s25 }
 0x447   : > { %s6356_s26 = smov %s4061_s28  ;;  %26 = sbr.rel (!%p24_p9) target bundleno = 6 (0x6), region = 103 }
 0x44b   : > { %s6355_s25 = smov %s6352_s22 }
 0x44c   :  { %3306 = vsyncpa [#allocation5], 1 }
 0x44d   :  { %3308 = vsyncpa [#allocation5 + $0x1], 1 }

</bundles_post_ra>
